<compile_context>
chip_gen: v5e
topology: v5e:2x2
jax: 0.10.0
libtpu: 0.0.40
codegen_flags: <defaults>
</compile_context>

<pallas_src>
import functools

import jax
import jax.numpy as jnp
from jax.experimental import pallas as pl
from jax.experimental.pallas import tpu as pltpu


def _spatial_attn_kernel(x_ref, w_ref, o_ref, pad_ref, *, ksize, pad):
    """One batch element per grid step.

    x_ref:   (1, C, H, W)      input tile (VMEM)
    w_ref:   (2*k*k,)          conv weight, flattened OIHW order (SMEM)
    o_ref:   (1, C, H, W)      output tile (VMEM)
    pad_ref: (2, H+2p, W+2p)   zero-padded [mean, max] planes (VMEM scratch)
    """
    _, C, H, W = x_ref.shape
    K = ksize
    p = pad

    x = x_ref[0]  # (C, H, W)

    # --- channel pooling: mean & max over C -> two (H, W) planes ------------
    mean_plane = jnp.mean(x, axis=0)
    max_plane = jnp.max(x, axis=0)

    # --- zero-padded pooled planes for the "same" convolution ---------------
    pad_ref[...] = jnp.zeros_like(pad_ref)
    pad_ref[0, pl.ds(p, H), pl.ds(p, W)] = mean_plane
    pad_ref[1, pl.ds(p, H), pl.ds(p, W)] = max_plane

    # --- kxk conv, 2 -> 1 channels: unrolled shifted-window VPU FMAs --------
    acc = jnp.zeros((H, W), jnp.float32)
    for kh in range(K):
        for kw in range(K):
            patch_mean = pad_ref[0, pl.ds(kh, H), pl.ds(kw, W)]  # (H, W)
            patch_max = pad_ref[1, pl.ds(kh, H), pl.ds(kw, W)]   # (H, W)
            w_mean = w_ref[kh * K + kw]          # scalar from SMEM
            w_max = w_ref[K * K + kh * K + kw]   # scalar from SMEM
            acc = acc + w_mean * patch_mean + w_max * patch_max

    att = jax.nn.sigmoid(acc)  # (H, W), EUP

    # --- gate: broadcast attention map over the channel axis ----------------
    o_ref[0] = (x * att).astype(o_ref.dtype)


def spatial_attention_forward(x_nchw, w_oihw):
    """SpatialAttention.forward.

    x_nchw: (B, C, H, W)   float32
    w_oihw: (1, 2, k, k)   PyTorch OIHW conv weight (cv1.weight), no bias
    returns (B, C, H, W)
    """
    B, C, H, W = x_nchw.shape
    O, I, K, K2 = w_oihw.shape
    assert O == 1 and I == 2 and K == K2 and K in (3, 7)
    p = K // 2  # "same" padding (3 for k=7, 1 for k=3)

    w_flat = w_oihw.reshape(-1)  # (2*k*k,), OIHW flatten: [i][kh][kw]

    kernel = functools.partial(_spatial_attn_kernel, ksize=K, pad=p)

    return pl.pallas_call(
        kernel,
        out_shape=jax.ShapeDtypeStruct((B, C, H, W), x_nchw.dtype),
        grid_spec=pltpu.PrefetchScalarGridSpec(
            num_scalar_prefetch=0,
            grid=(B,),
            in_specs=[
                pl.BlockSpec((1, C, H, W), lambda b: (b, 0, 0, 0)),
                pl.BlockSpec(memory_space=pltpu.MemorySpace.SMEM),
            ],
            out_specs=pl.BlockSpec((1, C, H, W), lambda b: (b, 0, 0, 0)),
            scratch_shapes=[
                pltpu.VMEM((2, H + 2 * p, W + 2 * p), jnp.float32),
            ],
        ),
        compiler_params=pltpu.CompilerParams(
            dimension_semantics=("parallel",),
            vmem_limit_bytes=32 * 1024 * 1024,  # raise v5e's 16 MiB default
        ),
    )(x_nchw, w_flat)


def _reference(x, w):
    """Pure-JAX reference (lax conv) mirroring the PyTorch module."""
    p = w.shape[-1] // 2
    pooled = jnp.concatenate(
        [jnp.mean(x, axis=1, keepdims=True),
         jnp.max(x, axis=1, keepdims=True)], axis=1)
    dn = jax.lax.conv_dimension_numbers(pooled.shape, w.shape,
                                        ("NCHW", "OIHW", "NCHW"))
    logit = jax.lax.conv_general_dilated(pooled, w, (1, 1), [(p, p), (p, p)],
                                         dimension_numbers=dn)
    return x * jax.nn.sigmoid(logit)


if __name__ == "__main__":
    key = jax.random.PRNGKey(0)
    kx, kw = jax.random.split(key, 2)

    B, C, H, W = 2, 4, 16, 16
    K = 7  # default SpatialAttention kernel size

    x = jax.random.normal(kx, (B, C, H, W), dtype=jnp.float32)
    w = jax.random.normal(kw, (1, 2, K, K), dtype=jnp.float32) * 0.1

    out = spatial_attention_forward(x, w)
    out = jax.block_until_ready(out)

    ref = _reference(x, w)
    assert out.shape == (B, C, H, W)
    assert jnp.allclose(out, ref, atol=1e-4, rtol=1e-4), "mismatch vs reference"

    print("KERNEL_OK")
</pallas_src>

<mosaic_0001>
module attributes {stable_mosaic.version = 11 : i64} {
  func.func @_spatial_attn_kernel(%arg0: i32, %arg1: memref<1x4x16x16xf32, #tpu.memory_space<vmem>>, %arg2: memref<98xf32, #tpu.memory_space<smem>>, %arg3: memref<1x4x16x16xf32, #tpu.memory_space<vmem>>, %arg4: memref<2x22x22xf32, #tpu.memory_space<vmem>>) attributes {dimension_semantics = [#tpu.dimension_semantics<parallel>], iteration_bounds = array<i64: 2>, scalar_prefetch = 0 : i64, scratch_operands = 1 : i64, tpu.core_type = #tpu.core_type<tc>, window_params = [{transform_indices = @transform_0, window_bounds = array<i64: 1, 4, 16, 16>}, {transform_indices = @transform_1, window_bounds = array<i64: 98>}, {transform_indices = @transform_2, window_bounds = array<i64: 1, 4, 16, 16>}]} {
    %c0 = arith.constant 0 : index
    %c0_0 = arith.constant 0 : index
    %c0_1 = arith.constant 0 : index
    %c0_2 = arith.constant 0 : index
    %0 = vector.load %arg1[%c0, %c0_0, %c0_1, %c0_2] : memref<1x4x16x16xf32, #tpu.memory_space<vmem>>, vector<1x4x16x16xf32>
    %1 = vector.shape_cast %0 : vector<1x4x16x16xf32> to vector<4x16x16xf32>
    %cst = arith.constant dense<0.000000e+00> : vector<16x16xf32>
    %2 = vector.multi_reduction <add>, %1, %cst [0] : vector<4x16x16xf32> to vector<16x16xf32>
    %cst_3 = arith.constant 4.000000e+00 : f32
    %3 = vector.broadcast %cst_3 : f32 to vector<16x16xf32>
    %4 = arith.divf %2, %3 : vector<16x16xf32>
    %cst_4 = arith.constant dense<0xFF800000> : vector<16x16xf32>
    %5 = vector.multi_reduction <maximumf>, %1, %cst_4 [0] : vector<4x16x16xf32> to vector<16x16xf32>
    %cst_5 = arith.constant 0.000000e+00 : f32
    %6 = vector.broadcast %cst_5 : f32 to vector<2x22x22xf32>
    %c0_6 = arith.constant 0 : index
    %c0_7 = arith.constant 0 : index
    %c0_8 = arith.constant 0 : index
    %7 = vector.load %arg4[%c0_6, %c0_7, %c0_8] : memref<2x22x22xf32, #tpu.memory_space<vmem>>, vector<2x22x22xf32>
    tpu.vector_store %arg4[%c0_6, %c0_7, %c0_8], %6 {strides = array<i32>} : memref<2x22x22xf32, #tpu.memory_space<vmem>>, vector<2x22x22xf32>,
    %c0_9 = arith.constant 0 : index
    %c3 = arith.constant 3 : index
    %c3_10 = arith.constant 3 : index
    %8 = vector.load %arg4[%c0_9, %c3, %c3_10] : memref<2x22x22xf32, #tpu.memory_space<vmem>>, vector<1x16x16xf32>
    %9 = vector.shape_cast %8 : vector<1x16x16xf32> to vector<16x16xf32>
    %10 = vector.shape_cast %4 : vector<16x16xf32> to vector<1x16x16xf32>
    tpu.vector_store %arg4[%c0_9, %c3, %c3_10], %10 {strides = array<i32>} : memref<2x22x22xf32, #tpu.memory_space<vmem>>, vector<1x16x16xf32>,
    %c1 = arith.constant 1 : index
    %c3_11 = arith.constant 3 : index
    %c3_12 = arith.constant 3 : index
    %11 = vector.load %arg4[%c1, %c3_11, %c3_12] : memref<2x22x22xf32, #tpu.memory_space<vmem>>, vector<1x16x16xf32>
    %12 = vector.shape_cast %11 : vector<1x16x16xf32> to vector<16x16xf32>
    %13 = vector.shape_cast %5 : vector<16x16xf32> to vector<1x16x16xf32>
    tpu.vector_store %arg4[%c1, %c3_11, %c3_12], %13 {strides = array<i32>} : memref<2x22x22xf32, #tpu.memory_space<vmem>>, vector<1x16x16xf32>,
    %cst_13 = arith.constant 0.000000e+00 : f32
    %14 = vector.broadcast %cst_13 : f32 to vector<16x16xf32>
    %c0_14 = arith.constant 0 : index
    %c0_15 = arith.constant 0 : index
    %c0_16 = arith.constant 0 : index
    %15 = vector.load %arg4[%c0_14, %c0_15, %c0_16] : memref<2x22x22xf32, #tpu.memory_space<vmem>>, vector<1x16x16xf32>
    %16 = vector.shape_cast %15 : vector<1x16x16xf32> to vector<16x16xf32>
    %c1_17 = arith.constant 1 : index
    %c0_18 = arith.constant 0 : index
    %c0_19 = arith.constant 0 : index
    %17 = vector.load %arg4[%c1_17, %c0_18, %c0_19] : memref<2x22x22xf32, #tpu.memory_space<vmem>>, vector<1x16x16xf32>
    %18 = vector.shape_cast %17 : vector<1x16x16xf32> to vector<16x16xf32>
    %c0_20 = arith.constant 0 : index
    %19 = memref.load %arg2[%c0_20] : memref<98xf32, #tpu.memory_space<smem>>
    %c49 = arith.constant 49 : index
    %20 = memref.load %arg2[%c49] : memref<98xf32, #tpu.memory_space<smem>>
    %21 = vector.broadcast %19 : f32 to vector<16x16xf32>
    %22 = arith.mulf %21, %16 : vector<16x16xf32>
    %23 = arith.addf %14, %22 : vector<16x16xf32>
    %24 = vector.broadcast %20 : f32 to vector<16x16xf32>
    %25 = arith.mulf %24, %18 : vector<16x16xf32>
    %26 = arith.addf %23, %25 : vector<16x16xf32>
    %c0_21 = arith.constant 0 : index
    %c0_22 = arith.constant 0 : index
    %c1_23 = arith.constant 1 : index
    %27 = vector.load %arg4[%c0_21, %c0_22, %c1_23] : memref<2x22x22xf32, #tpu.memory_space<vmem>>, vector<1x16x16xf32>
    %28 = vector.shape_cast %27 : vector<1x16x16xf32> to vector<16x16xf32>
    %c1_24 = arith.constant 1 : index
    %c0_25 = arith.constant 0 : index
    %c1_26 = arith.constant 1 : index
    %29 = vector.load %arg4[%c1_24, %c0_25, %c1_26] : memref<2x22x22xf32, #tpu.memory_space<vmem>>, vector<1x16x16xf32>
    %30 = vector.shape_cast %29 : vector<1x16x16xf32> to vector<16x16xf32>
    %c1_27 = arith.constant 1 : index
    %31 = memref.load %arg2[%c1_27] : memref<98xf32, #tpu.memory_space<smem>>
    %c50 = arith.constant 50 : index
    %32 = memref.load %arg2[%c50] : memref<98xf32, #tpu.memory_space<smem>>
    %33 = vector.broadcast %31 : f32 to vector<16x16xf32>
    %34 = arith.mulf %33, %28 : vector<16x16xf32>
    %35 = arith.addf %26, %34 : vector<16x16xf32>
    %36 = vector.broadcast %32 : f32 to vector<16x16xf32>
    %37 = arith.mulf %36, %30 : vector<16x16xf32>
    %38 = arith.addf %35, %37 : vector<16x16xf32>
    %c0_28 = arith.constant 0 : index
    %c0_29 = arith.constant 0 : index
    %c2 = arith.constant 2 : index
    %39 = vector.load %arg4[%c0_28, %c0_29, %c2] : memref<2x22x22xf32, #tpu.memory_space<vmem>>, vector<1x16x16xf32>
    %40 = vector.shape_cast %39 : vector<1x16x16xf32> to vector<16x16xf32>
    %c1_30 = arith.constant 1 : index
    %c0_31 = arith.constant 0 : index
    %c2_32 = arith.constant 2 : index
    %41 = vector.load %arg4[%c1_30, %c0_31, %c2_32] : memref<2x22x22xf32, #tpu.memory_space<vmem>>, vector<1x16x16xf32>
    %42 = vector.shape_cast %41 : vector<1x16x16xf32> to vector<16x16xf32>
    %c2_33 = arith.constant 2 : index
    %43 = memref.load %arg2[%c2_33] : memref<98xf32, #tpu.memory_space<smem>>
    %c51 = arith.constant 51 : index
    %44 = memref.load %arg2[%c51] : memref<98xf32, #tpu.memory_space<smem>>
    %45 = vector.broadcast %43 : f32 to vector<16x16xf32>
    %46 = arith.mulf %45, %40 : vector<16x16xf32>
    %47 = arith.addf %38, %46 : vector<16x16xf32>
    %48 = vector.broadcast %44 : f32 to vector<16x16xf32>
    %49 = arith.mulf %48, %42 : vector<16x16xf32>
    %50 = arith.addf %47, %49 : vector<16x16xf32>
    %c0_34 = arith.constant 0 : index
    %c0_35 = arith.constant 0 : index
    %c3_36 = arith.constant 3 : index
    %51 = vector.load %arg4[%c0_34, %c0_35, %c3_36] : memref<2x22x22xf32, #tpu.memory_space<vmem>>, vector<1x16x16xf32>
    %52 = vector.shape_cast %51 : vector<1x16x16xf32> to vector<16x16xf32>
    %c1_37 = arith.constant 1 : index
    %c0_38 = arith.constant 0 : index
    %c3_39 = arith.constant 3 : index
    %53 = vector.load %arg4[%c1_37, %c0_38, %c3_39] : memref<2x22x22xf32, #tpu.memory_space<vmem>>, vector<1x16x16xf32>
    %54 = vector.shape_cast %53 : vector<1x16x16xf32> to vector<16x16xf32>
    %c3_40 = arith.constant 3 : index
    %55 = memref.load %arg2[%c3_40] : memref<98xf32, #tpu.memory_space<smem>>
    %c52 = arith.constant 52 : index
    %56 = memref.load %arg2[%c52] : memref<98xf32, #tpu.memory_space<smem>>
    %57 = vector.broadcast %55 : f32 to vector<16x16xf32>
    %58 = arith.mulf %57, %52 : vector<16x16xf32>
    %59 = arith.addf %50, %58 : vector<16x16xf32>
    %60 = vector.broadcast %56 : f32 to vector<16x16xf32>
    %61 = arith.mulf %60, %54 : vector<16x16xf32>
    %62 = arith.addf %59, %61 : vector<16x16xf32>
    %c0_41 = arith.constant 0 : index
    %c0_42 = arith.constant 0 : index
    %c4 = arith.constant 4 : index
    %63 = vector.load %arg4[%c0_41, %c0_42, %c4] : memref<2x22x22xf32, #tpu.memory_space<vmem>>, vector<1x16x16xf32>
    %64 = vector.shape_cast %63 : vector<1x16x16xf32> to vector<16x16xf32>
    %c1_43 = arith.constant 1 : index
    %c0_44 = arith.constant 0 : index
    %c4_45 = arith.constant 4 : index
    %65 = vector.load %arg4[%c1_43, %c0_44, %c4_45] : memref<2x22x22xf32, #tpu.memory_space<vmem>>, vector<1x16x16xf32>
    %66 = vector.shape_cast %65 : vector<1x16x16xf32> to vector<16x16xf32>
    %c4_46 = arith.constant 4 : index
    %67 = memref.load %arg2[%c4_46] : memref<98xf32, #tpu.memory_space<smem>>
    %c53 = arith.constant 53 : index
    %68 = memref.load %arg2[%c53] : memref<98xf32, #tpu.memory_space<smem>>
    %69 = vector.broadcast %67 : f32 to vector<16x16xf32>
    %70 = arith.mulf %69, %64 : vector<16x16xf32>
    %71 = arith.addf %62, %70 : vector<16x16xf32>
    %72 = vector.broadcast %68 : f32 to vector<16x16xf32>
    %73 = arith.mulf %72, %66 : vector<16x16xf32>
    %74 = arith.addf %71, %73 : vector<16x16xf32>
    %c0_47 = arith.constant 0 : index
    %c0_48 = arith.constant 0 : index
    %c5 = arith.constant 5 : index
    %75 = vector.load %arg4[%c0_47, %c0_48, %c5] : memref<2x22x22xf32, #tpu.memory_space<vmem>>, vector<1x16x16xf32>
    %76 = vector.shape_cast %75 : vector<1x16x16xf32> to vector<16x16xf32>
    %c1_49 = arith.constant 1 : index
    %c0_50 = arith.constant 0 : index
    %c5_51 = arith.constant 5 : index
    %77 = vector.load %arg4[%c1_49, %c0_50, %c5_51] : memref<2x22x22xf32, #tpu.memory_space<vmem>>, vector<1x16x16xf32>
    %78 = vector.shape_cast %77 : vector<1x16x16xf32> to vector<16x16xf32>
    %c5_52 = arith.constant 5 : index
    %79 = memref.load %arg2[%c5_52] : memref<98xf32, #tpu.memory_space<smem>>
    %c54 = arith.constant 54 : index
    %80 = memref.load %arg2[%c54] : memref<98xf32, #tpu.memory_space<smem>>
    %81 = vector.broadcast %79 : f32 to vector<16x16xf32>
    %82 = arith.mulf %81, %76 : vector<16x16xf32>
    %83 = arith.addf %74, %82 : vector<16x16xf32>
    %84 = vector.broadcast %80 : f32 to vector<16x16xf32>
    %85 = arith.mulf %84, %78 : vector<16x16xf32>
    %86 = arith.addf %83, %85 : vector<16x16xf32>
    %c0_53 = arith.constant 0 : index
    %c0_54 = arith.constant 0 : index
    %c6 = arith.constant 6 : index
    %87 = vector.load %arg4[%c0_53, %c0_54, %c6] : memref<2x22x22xf32, #tpu.memory_space<vmem>>, vector<1x16x16xf32>
    %88 = vector.shape_cast %87 : vector<1x16x16xf32> to vector<16x16xf32>
    %c1_55 = arith.constant 1 : index
    %c0_56 = arith.constant 0 : index
    %c6_57 = arith.constant 6 : index
    %89 = vector.load %arg4[%c1_55, %c0_56, %c6_57] : memref<2x22x22xf32, #tpu.memory_space<vmem>>, vector<1x16x16xf32>
    %90 = vector.shape_cast %89 : vector<1x16x16xf32> to vector<16x16xf32>
    %c6_58 = arith.constant 6 : index
    %91 = memref.load %arg2[%c6_58] : memref<98xf32, #tpu.memory_space<smem>>
    %c55 = arith.constant 55 : index
    %92 = memref.load %arg2[%c55] : memref<98xf32, #tpu.memory_space<smem>>
    %93 = vector.broadcast %91 : f32 to vector<16x16xf32>
    %94 = arith.mulf %93, %88 : vector<16x16xf32>
    %95 = arith.addf %86, %94 : vector<16x16xf32>
    %96 = vector.broadcast %92 : f32 to vector<16x16xf32>
    %97 = arith.mulf %96, %90 : vector<16x16xf32>
    %98 = arith.addf %95, %97 : vector<16x16xf32>
    %c0_59 = arith.constant 0 : index
    %c1_60 = arith.constant 1 : index
    %c0_61 = arith.constant 0 : index
    %99 = vector.load %arg4[%c0_59, %c1_60, %c0_61] : memref<2x22x22xf32, #tpu.memory_space<vmem>>, vector<1x16x16xf32>
    %100 = vector.shape_cast %99 : vector<1x16x16xf32> to vector<16x16xf32>
    %c1_62 = arith.constant 1 : index
    %c1_63 = arith.constant 1 : index
    %c0_64 = arith.constant 0 : index
    %101 = vector.load %arg4[%c1_62, %c1_63, %c0_64] : memref<2x22x22xf32, #tpu.memory_space<vmem>>, vector<1x16x16xf32>
    %102 = vector.shape_cast %101 : vector<1x16x16xf32> to vector<16x16xf32>
    %c7 = arith.constant 7 : index
    %103 = memref.load %arg2[%c7] : memref<98xf32, #tpu.memory_space<smem>>
    %c56 = arith.constant 56 : index
    %104 = memref.load %arg2[%c56] : memref<98xf32, #tpu.memory_space<smem>>
    %105 = vector.broadcast %103 : f32 to vector<16x16xf32>
    %106 = arith.mulf %105, %100 : vector<16x16xf32>
    %107 = arith.addf %98, %106 : vector<16x16xf32>
    %108 = vector.broadcast %104 : f32 to vector<16x16xf32>
    %109 = arith.mulf %108, %102 : vector<16x16xf32>
    %110 = arith.addf %107, %109 : vector<16x16xf32>
    %c0_65 = arith.constant 0 : index
    %c1_66 = arith.constant 1 : index
    %c1_67 = arith.constant 1 : index
    %111 = vector.load %arg4[%c0_65, %c1_66, %c1_67] : memref<2x22x22xf32, #tpu.memory_space<vmem>>, vector<1x16x16xf32>
    %112 = vector.shape_cast %111 : vector<1x16x16xf32> to vector<16x16xf32>
    %c1_68 = arith.constant 1 : index
    %c1_69 = arith.constant 1 : index
    %c1_70 = arith.constant 1 : index
    %113 = vector.load %arg4[%c1_68, %c1_69, %c1_70] : memref<2x22x22xf32, #tpu.memory_space<vmem>>, vector<1x16x16xf32>
    %114 = vector.shape_cast %113 : vector<1x16x16xf32> to vector<16x16xf32>
    %c8 = arith.constant 8 : index
    %115 = memref.load %arg2[%c8] : memref<98xf32, #tpu.memory_space<smem>>
    %c57 = arith.constant 57 : index
    %116 = memref.load %arg2[%c57] : memref<98xf32, #tpu.memory_space<smem>>
    %117 = vector.broadcast %115 : f32 to vector<16x16xf32>
    %118 = arith.mulf %117, %112 : vector<16x16xf32>
    %119 = arith.addf %110, %118 : vector<16x16xf32>
    %120 = vector.broadcast %116 : f32 to vector<16x16xf32>
    %121 = arith.mulf %120, %114 : vector<16x16xf32>
    %122 = arith.addf %119, %121 : vector<16x16xf32>
    %c0_71 = arith.constant 0 : index
    %c1_72 = arith.constant 1 : index
    %c2_73 = arith.constant 2 : index
    %123 = vector.load %arg4[%c0_71, %c1_72, %c2_73] : memref<2x22x22xf32, #tpu.memory_space<vmem>>, vector<1x16x16xf32>
    %124 = vector.shape_cast %123 : vector<1x16x16xf32> to vector<16x16xf32>
    %c1_74 = arith.constant 1 : index
    %c1_75 = arith.constant 1 : index
    %c2_76 = arith.constant 2 : index
    %125 = vector.load %arg4[%c1_74, %c1_75, %c2_76] : memref<2x22x22xf32, #tpu.memory_space<vmem>>, vector<1x16x16xf32>
    %126 = vector.shape_cast %125 : vector<1x16x16xf32> to vector<16x16xf32>
    %c9 = arith.constant 9 : index
    %127 = memref.load %arg2[%c9] : memref<98xf32, #tpu.memory_space<smem>>
    %c58 = arith.constant 58 : index
    %128 = memref.load %arg2[%c58] : memref<98xf32, #tpu.memory_space<smem>>
    %129 = vector.broadcast %127 : f32 to vector<16x16xf32>
    %130 = arith.mulf %129, %124 : vector<16x16xf32>
    %131 = arith.addf %122, %130 : vector<16x16xf32>
    %132 = vector.broadcast %128 : f32 to vector<16x16xf32>
    %133 = arith.mulf %132, %126 : vector<16x16xf32>
    %134 = arith.addf %131, %133 : vector<16x16xf32>
    %c0_77 = arith.constant 0 : index
    %c1_78 = arith.constant 1 : index
    %c3_79 = arith.constant 3 : index
    %135 = vector.load %arg4[%c0_77, %c1_78, %c3_79] : memref<2x22x22xf32, #tpu.memory_space<vmem>>, vector<1x16x16xf32>
    %136 = vector.shape_cast %135 : vector<1x16x16xf32> to vector<16x16xf32>
    %c1_80 = arith.constant 1 : index
    %c1_81 = arith.constant 1 : index
    %c3_82 = arith.constant 3 : index
    %137 = vector.load %arg4[%c1_80, %c1_81, %c3_82] : memref<2x22x22xf32, #tpu.memory_space<vmem>>, vector<1x16x16xf32>
    %138 = vector.shape_cast %137 : vector<1x16x16xf32> to vector<16x16xf32>
    %c10 = arith.constant 10 : index
    %139 = memref.load %arg2[%c10] : memref<98xf32, #tpu.memory_space<smem>>
    %c59 = arith.constant 59 : index
    %140 = memref.load %arg2[%c59] : memref<98xf32, #tpu.memory_space<smem>>
    %141 = vector.broadcast %139 : f32 to vector<16x16xf32>
    %142 = arith.mulf %141, %136 : vector<16x16xf32>
    %143 = arith.addf %134, %142 : vector<16x16xf32>
    %144 = vector.broadcast %140 : f32 to vector<16x16xf32>
    %145 = arith.mulf %144, %138 : vector<16x16xf32>
    %146 = arith.addf %143, %145 : vector<16x16xf32>
    %c0_83 = arith.constant 0 : index
    %c1_84 = arith.constant 1 : index
    %c4_85 = arith.constant 4 : index
    %147 = vector.load %arg4[%c0_83, %c1_84, %c4_85] : memref<2x22x22xf32, #tpu.memory_space<vmem>>, vector<1x16x16xf32>
    %148 = vector.shape_cast %147 : vector<1x16x16xf32> to vector<16x16xf32>
    %c1_86 = arith.constant 1 : index
    %c1_87 = arith.constant 1 : index
    %c4_88 = arith.constant 4 : index
    %149 = vector.load %arg4[%c1_86, %c1_87, %c4_88] : memref<2x22x22xf32, #tpu.memory_space<vmem>>, vector<1x16x16xf32>
    %150 = vector.shape_cast %149 : vector<1x16x16xf32> to vector<16x16xf32>
    %c11 = arith.constant 11 : index
    %151 = memref.load %arg2[%c11] : memref<98xf32, #tpu.memory_space<smem>>
    %c60 = arith.constant 60 : index
    %152 = memref.load %arg2[%c60] : memref<98xf32, #tpu.memory_space<smem>>
    %153 = vector.broadcast %151 : f32 to vector<16x16xf32>
    %154 = arith.mulf %153, %148 : vector<16x16xf32>
    %155 = arith.addf %146, %154 : vector<16x16xf32>
    %156 = vector.broadcast %152 : f32 to vector<16x16xf32>
    %157 = arith.mulf %156, %150 : vector<16x16xf32>
    %158 = arith.addf %155, %157 : vector<16x16xf32>
    %c0_89 = arith.constant 0 : index
    %c1_90 = arith.constant 1 : index
    %c5_91 = arith.constant 5 : index
    %159 = vector.load %arg4[%c0_89, %c1_90, %c5_91] : memref<2x22x22xf32, #tpu.memory_space<vmem>>, vector<1x16x16xf32>
    %160 = vector.shape_cast %159 : vector<1x16x16xf32> to vector<16x16xf32>
    %c1_92 = arith.constant 1 : index
    %c1_93 = arith.constant 1 : index
    %c5_94 = arith.constant 5 : index
    %161 = vector.load %arg4[%c1_92, %c1_93, %c5_94] : memref<2x22x22xf32, #tpu.memory_space<vmem>>, vector<1x16x16xf32>
    %162 = vector.shape_cast %161 : vector<1x16x16xf32> to vector<16x16xf32>
    %c12 = arith.constant 12 : index
    %163 = memref.load %arg2[%c12] : memref<98xf32, #tpu.memory_space<smem>>
    %c61 = arith.constant 61 : index
    %164 = memref.load %arg2[%c61] : memref<98xf32, #tpu.memory_space<smem>>
    %165 = vector.broadcast %163 : f32 to vector<16x16xf32>
    %166 = arith.mulf %165, %160 : vector<16x16xf32>
    %167 = arith.addf %158, %166 : vector<16x16xf32>
    %168 = vector.broadcast %164 : f32 to vector<16x16xf32>
    %169 = arith.mulf %168, %162 : vector<16x16xf32>
    %170 = arith.addf %167, %169 : vector<16x16xf32>
    %c0_95 = arith.constant 0 : index
    %c1_96 = arith.constant 1 : index
    %c6_97 = arith.constant 6 : index
    %171 = vector.load %arg4[%c0_95, %c1_96, %c6_97] : memref<2x22x22xf32, #tpu.memory_space<vmem>>, vector<1x16x16xf32>
    %172 = vector.shape_cast %171 : vector<1x16x16xf32> to vector<16x16xf32>
    %c1_98 = arith.constant 1 : index
    %c1_99 = arith.constant 1 : index
    %c6_100 = arith.constant 6 : index
    %173 = vector.load %arg4[%c1_98, %c1_99, %c6_100] : memref<2x22x22xf32, #tpu.memory_space<vmem>>, vector<1x16x16xf32>
    %174 = vector.shape_cast %173 : vector<1x16x16xf32> to vector<16x16xf32>
    %c13 = arith.constant 13 : index
    %175 = memref.load %arg2[%c13] : memref<98xf32, #tpu.memory_space<smem>>
    %c62 = arith.constant 62 : index
    %176 = memref.load %arg2[%c62] : memref<98xf32, #tpu.memory_space<smem>>
    %177 = vector.broadcast %175 : f32 to vector<16x16xf32>
    %178 = arith.mulf %177, %172 : vector<16x16xf32>
    %179 = arith.addf %170, %178 : vector<16x16xf32>
    %180 = vector.broadcast %176 : f32 to vector<16x16xf32>
    %181 = arith.mulf %180, %174 : vector<16x16xf32>
    %182 = arith.addf %179, %181 : vector<16x16xf32>
    %c0_101 = arith.constant 0 : index
    %c2_102 = arith.constant 2 : index
    %c0_103 = arith.constant 0 : index
    %183 = vector.load %arg4[%c0_101, %c2_102, %c0_103] : memref<2x22x22xf32, #tpu.memory_space<vmem>>, vector<1x16x16xf32>
    %184 = vector.shape_cast %183 : vector<1x16x16xf32> to vector<16x16xf32>
    %c1_104 = arith.constant 1 : index
    %c2_105 = arith.constant 2 : index
    %c0_106 = arith.constant 0 : index
    %185 = vector.load %arg4[%c1_104, %c2_105, %c0_106] : memref<2x22x22xf32, #tpu.memory_space<vmem>>, vector<1x16x16xf32>
    %186 = vector.shape_cast %185 : vector<1x16x16xf32> to vector<16x16xf32>
    %c14 = arith.constant 14 : index
    %187 = memref.load %arg2[%c14] : memref<98xf32, #tpu.memory_space<smem>>
    %c63 = arith.constant 63 : index
    %188 = memref.load %arg2[%c63] : memref<98xf32, #tpu.memory_space<smem>>
    %189 = vector.broadcast %187 : f32 to vector<16x16xf32>
    %190 = arith.mulf %189, %184 : vector<16x16xf32>
    %191 = arith.addf %182, %190 : vector<16x16xf32>
    %192 = vector.broadcast %188 : f32 to vector<16x16xf32>
    %193 = arith.mulf %192, %186 : vector<16x16xf32>
    %194 = arith.addf %191, %193 : vector<16x16xf32>
    %c0_107 = arith.constant 0 : index
    %c2_108 = arith.constant 2 : index
    %c1_109 = arith.constant 1 : index
    %195 = vector.load %arg4[%c0_107, %c2_108, %c1_109] : memref<2x22x22xf32, #tpu.memory_space<vmem>>, vector<1x16x16xf32>
    %196 = vector.shape_cast %195 : vector<1x16x16xf32> to vector<16x16xf32>
    %c1_110 = arith.constant 1 : index
    %c2_111 = arith.constant 2 : index
    %c1_112 = arith.constant 1 : index
    %197 = vector.load %arg4[%c1_110, %c2_111, %c1_112] : memref<2x22x22xf32, #tpu.memory_space<vmem>>, vector<1x16x16xf32>
    %198 = vector.shape_cast %197 : vector<1x16x16xf32> to vector<16x16xf32>
    %c15 = arith.constant 15 : index
    %199 = memref.load %arg2[%c15] : memref<98xf32, #tpu.memory_space<smem>>
    %c64 = arith.constant 64 : index
    %200 = memref.load %arg2[%c64] : memref<98xf32, #tpu.memory_space<smem>>
    %201 = vector.broadcast %199 : f32 to vector<16x16xf32>
    %202 = arith.mulf %201, %196 : vector<16x16xf32>
    %203 = arith.addf %194, %202 : vector<16x16xf32>
    %204 = vector.broadcast %200 : f32 to vector<16x16xf32>
    %205 = arith.mulf %204, %198 : vector<16x16xf32>
    %206 = arith.addf %203, %205 : vector<16x16xf32>
    %c0_113 = arith.constant 0 : index
    %c2_114 = arith.constant 2 : index
    %c2_115 = arith.constant 2 : index
    %207 = vector.load %arg4[%c0_113, %c2_114, %c2_115] : memref<2x22x22xf32, #tpu.memory_space<vmem>>, vector<1x16x16xf32>
    %208 = vector.shape_cast %207 : vector<1x16x16xf32> to vector<16x16xf32>
    %c1_116 = arith.constant 1 : index
    %c2_117 = arith.constant 2 : index
    %c2_118 = arith.constant 2 : index
    %209 = vector.load %arg4[%c1_116, %c2_117, %c2_118] : memref<2x22x22xf32, #tpu.memory_space<vmem>>, vector<1x16x16xf32>
    %210 = vector.shape_cast %209 : vector<1x16x16xf32> to vector<16x16xf32>
    %c16 = arith.constant 16 : index
    %211 = memref.load %arg2[%c16] : memref<98xf32, #tpu.memory_space<smem>>
    %c65 = arith.constant 65 : index
    %212 = memref.load %arg2[%c65] : memref<98xf32, #tpu.memory_space<smem>>
    %213 = vector.broadcast %211 : f32 to vector<16x16xf32>
    %214 = arith.mulf %213, %208 : vector<16x16xf32>
    %215 = arith.addf %206, %214 : vector<16x16xf32>
    %216 = vector.broadcast %212 : f32 to vector<16x16xf32>
    %217 = arith.mulf %216, %210 : vector<16x16xf32>
    %218 = arith.addf %215, %217 : vector<16x16xf32>
    %c0_119 = arith.constant 0 : index
    %c2_120 = arith.constant 2 : index
    %c3_121 = arith.constant 3 : index
    %219 = vector.load %arg4[%c0_119, %c2_120, %c3_121] : memref<2x22x22xf32, #tpu.memory_space<vmem>>, vector<1x16x16xf32>
    %220 = vector.shape_cast %219 : vector<1x16x16xf32> to vector<16x16xf32>
    %c1_122 = arith.constant 1 : index
    %c2_123 = arith.constant 2 : index
    %c3_124 = arith.constant 3 : index
    %221 = vector.load %arg4[%c1_122, %c2_123, %c3_124] : memref<2x22x22xf32, #tpu.memory_space<vmem>>, vector<1x16x16xf32>
    %222 = vector.shape_cast %221 : vector<1x16x16xf32> to vector<16x16xf32>
    %c17 = arith.constant 17 : index
    %223 = memref.load %arg2[%c17] : memref<98xf32, #tpu.memory_space<smem>>
    %c66 = arith.constant 66 : index
    %224 = memref.load %arg2[%c66] : memref<98xf32, #tpu.memory_space<smem>>
    %225 = vector.broadcast %223 : f32 to vector<16x16xf32>
    %226 = arith.mulf %225, %220 : vector<16x16xf32>
    %227 = arith.addf %218, %226 : vector<16x16xf32>
    %228 = vector.broadcast %224 : f32 to vector<16x16xf32>
    %229 = arith.mulf %228, %222 : vector<16x16xf32>
    %230 = arith.addf %227, %229 : vector<16x16xf32>
    %c0_125 = arith.constant 0 : index
    %c2_126 = arith.constant 2 : index
    %c4_127 = arith.constant 4 : index
    %231 = vector.load %arg4[%c0_125, %c2_126, %c4_127] : memref<2x22x22xf32, #tpu.memory_space<vmem>>, vector<1x16x16xf32>
    %232 = vector.shape_cast %231 : vector<1x16x16xf32> to vector<16x16xf32>
    %c1_128 = arith.constant 1 : index
    %c2_129 = arith.constant 2 : index
    %c4_130 = arith.constant 4 : index
    %233 = vector.load %arg4[%c1_128, %c2_129, %c4_130] : memref<2x22x22xf32, #tpu.memory_space<vmem>>, vector<1x16x16xf32>
    %234 = vector.shape_cast %233 : vector<1x16x16xf32> to vector<16x16xf32>
    %c18 = arith.constant 18 : index
    %235 = memref.load %arg2[%c18] : memref<98xf32, #tpu.memory_space<smem>>
    %c67 = arith.constant 67 : index
    %236 = memref.load %arg2[%c67] : memref<98xf32, #tpu.memory_space<smem>>
    %237 = vector.broadcast %235 : f32 to vector<16x16xf32>
    %238 = arith.mulf %237, %232 : vector<16x16xf32>
    %239 = arith.addf %230, %238 : vector<16x16xf32>
    %240 = vector.broadcast %236 : f32 to vector<16x16xf32>
    %241 = arith.mulf %240, %234 : vector<16x16xf32>
    %242 = arith.addf %239, %241 : vector<16x16xf32>
    %c0_131 = arith.constant 0 : index
    %c2_132 = arith.constant 2 : index
    %c5_133 = arith.constant 5 : index
    %243 = vector.load %arg4[%c0_131, %c2_132, %c5_133] : memref<2x22x22xf32, #tpu.memory_space<vmem>>, vector<1x16x16xf32>
    %244 = vector.shape_cast %243 : vector<1x16x16xf32> to vector<16x16xf32>
    %c1_134 = arith.constant 1 : index
    %c2_135 = arith.constant 2 : index
    %c5_136 = arith.constant 5 : index
    %245 = vector.load %arg4[%c1_134, %c2_135, %c5_136] : memref<2x22x22xf32, #tpu.memory_space<vmem>>, vector<1x16x16xf32>
    %246 = vector.shape_cast %245 : vector<1x16x16xf32> to vector<16x16xf32>
    %c19 = arith.constant 19 : index
    %247 = memref.load %arg2[%c19] : memref<98xf32, #tpu.memory_space<smem>>
    %c68 = arith.constant 68 : index
    %248 = memref.load %arg2[%c68] : memref<98xf32, #tpu.memory_space<smem>>
    %249 = vector.broadcast %247 : f32 to vector<16x16xf32>
    %250 = arith.mulf %249, %244 : vector<16x16xf32>
    %251 = arith.addf %242, %250 : vector<16x16xf32>
    %252 = vector.broadcast %248 : f32 to vector<16x16xf32>
    %253 = arith.mulf %252, %246 : vector<16x16xf32>
    %254 = arith.addf %251, %253 : vector<16x16xf32>
    %c0_137 = arith.constant 0 : index
    %c2_138 = arith.constant 2 : index
    %c6_139 = arith.constant 6 : index
    %255 = vector.load %arg4[%c0_137, %c2_138, %c6_139] : memref<2x22x22xf32, #tpu.memory_space<vmem>>, vector<1x16x16xf32>
    %256 = vector.shape_cast %255 : vector<1x16x16xf32> to vector<16x16xf32>
    %c1_140 = arith.constant 1 : index
    %c2_141 = arith.constant 2 : index
    %c6_142 = arith.constant 6 : index
    %257 = vector.load %arg4[%c1_140, %c2_141, %c6_142] : memref<2x22x22xf32, #tpu.memory_space<vmem>>, vector<1x16x16xf32>
    %258 = vector.shape_cast %257 : vector<1x16x16xf32> to vector<16x16xf32>
    %c20 = arith.constant 20 : index
    %259 = memref.load %arg2[%c20] : memref<98xf32, #tpu.memory_space<smem>>
    %c69 = arith.constant 69 : index
    %260 = memref.load %arg2[%c69] : memref<98xf32, #tpu.memory_space<smem>>
    %261 = vector.broadcast %259 : f32 to vector<16x16xf32>
    %262 = arith.mulf %261, %256 : vector<16x16xf32>
    %263 = arith.addf %254, %262 : vector<16x16xf32>
    %264 = vector.broadcast %260 : f32 to vector<16x16xf32>
    %265 = arith.mulf %264, %258 : vector<16x16xf32>
    %266 = arith.addf %263, %265 : vector<16x16xf32>
    %c0_143 = arith.constant 0 : index
    %c3_144 = arith.constant 3 : index
    %c0_145 = arith.constant 0 : index
    %267 = vector.load %arg4[%c0_143, %c3_144, %c0_145] : memref<2x22x22xf32, #tpu.memory_space<vmem>>, vector<1x16x16xf32>
    %268 = vector.shape_cast %267 : vector<1x16x16xf32> to vector<16x16xf32>
    %c1_146 = arith.constant 1 : index
    %c3_147 = arith.constant 3 : index
    %c0_148 = arith.constant 0 : index
    %269 = vector.load %arg4[%c1_146, %c3_147, %c0_148] : memref<2x22x22xf32, #tpu.memory_space<vmem>>, vector<1x16x16xf32>
    %270 = vector.shape_cast %269 : vector<1x16x16xf32> to vector<16x16xf32>
    %c21 = arith.constant 21 : index
    %271 = memref.load %arg2[%c21] : memref<98xf32, #tpu.memory_space<smem>>
    %c70 = arith.constant 70 : index
    %272 = memref.load %arg2[%c70] : memref<98xf32, #tpu.memory_space<smem>>
    %273 = vector.broadcast %271 : f32 to vector<16x16xf32>
    %274 = arith.mulf %273, %268 : vector<16x16xf32>
    %275 = arith.addf %266, %274 : vector<16x16xf32>
    %276 = vector.broadcast %272 : f32 to vector<16x16xf32>
    %277 = arith.mulf %276, %270 : vector<16x16xf32>
    %278 = arith.addf %275, %277 : vector<16x16xf32>
    %c0_149 = arith.constant 0 : index
    %c3_150 = arith.constant 3 : index
    %c1_151 = arith.constant 1 : index
    %279 = vector.load %arg4[%c0_149, %c3_150, %c1_151] : memref<2x22x22xf32, #tpu.memory_space<vmem>>, vector<1x16x16xf32>
    %280 = vector.shape_cast %279 : vector<1x16x16xf32> to vector<16x16xf32>
    %c1_152 = arith.constant 1 : index
    %c3_153 = arith.constant 3 : index
    %c1_154 = arith.constant 1 : index
    %281 = vector.load %arg4[%c1_152, %c3_153, %c1_154] : memref<2x22x22xf32, #tpu.memory_space<vmem>>, vector<1x16x16xf32>
    %282 = vector.shape_cast %281 : vector<1x16x16xf32> to vector<16x16xf32>
    %c22 = arith.constant 22 : index
    %283 = memref.load %arg2[%c22] : memref<98xf32, #tpu.memory_space<smem>>
    %c71 = arith.constant 71 : index
    %284 = memref.load %arg2[%c71] : memref<98xf32, #tpu.memory_space<smem>>
    %285 = vector.broadcast %283 : f32 to vector<16x16xf32>
    %286 = arith.mulf %285, %280 : vector<16x16xf32>
    %287 = arith.addf %278, %286 : vector<16x16xf32>
    %288 = vector.broadcast %284 : f32 to vector<16x16xf32>
    %289 = arith.mulf %288, %282 : vector<16x16xf32>
    %290 = arith.addf %287, %289 : vector<16x16xf32>
    %c0_155 = arith.constant 0 : index
    %c3_156 = arith.constant 3 : index
    %c2_157 = arith.constant 2 : index
    %291 = vector.load %arg4[%c0_155, %c3_156, %c2_157] : memref<2x22x22xf32, #tpu.memory_space<vmem>>, vector<1x16x16xf32>
    %292 = vector.shape_cast %291 : vector<1x16x16xf32> to vector<16x16xf32>
    %c1_158 = arith.constant 1 : index
    %c3_159 = arith.constant 3 : index
    %c2_160 = arith.constant 2 : index
    %293 = vector.load %arg4[%c1_158, %c3_159, %c2_160] : memref<2x22x22xf32, #tpu.memory_space<vmem>>, vector<1x16x16xf32>
    %294 = vector.shape_cast %293 : vector<1x16x16xf32> to vector<16x16xf32>
    %c23 = arith.constant 23 : index
    %295 = memref.load %arg2[%c23] : memref<98xf32, #tpu.memory_space<smem>>
    %c72 = arith.constant 72 : index
    %296 = memref.load %arg2[%c72] : memref<98xf32, #tpu.memory_space<smem>>
    %297 = vector.broadcast %295 : f32 to vector<16x16xf32>
    %298 = arith.mulf %297, %292 : vector<16x16xf32>
    %299 = arith.addf %290, %298 : vector<16x16xf32>
    %300 = vector.broadcast %296 : f32 to vector<16x16xf32>
    %301 = arith.mulf %300, %294 : vector<16x16xf32>
    %302 = arith.addf %299, %301 : vector<16x16xf32>
    %c0_161 = arith.constant 0 : index
    %c3_162 = arith.constant 3 : index
    %c3_163 = arith.constant 3 : index
    %303 = vector.load %arg4[%c0_161, %c3_162, %c3_163] : memref<2x22x22xf32, #tpu.memory_space<vmem>>, vector<1x16x16xf32>
    %304 = vector.shape_cast %303 : vector<1x16x16xf32> to vector<16x16xf32>
    %c1_164 = arith.constant 1 : index
    %c3_165 = arith.constant 3 : index
    %c3_166 = arith.constant 3 : index
    %305 = vector.load %arg4[%c1_164, %c3_165, %c3_166] : memref<2x22x22xf32, #tpu.memory_space<vmem>>, vector<1x16x16xf32>
    %306 = vector.shape_cast %305 : vector<1x16x16xf32> to vector<16x16xf32>
    %c24 = arith.constant 24 : index
    %307 = memref.load %arg2[%c24] : memref<98xf32, #tpu.memory_space<smem>>
    %c73 = arith.constant 73 : index
    %308 = memref.load %arg2[%c73] : memref<98xf32, #tpu.memory_space<smem>>
    %309 = vector.broadcast %307 : f32 to vector<16x16xf32>
    %310 = arith.mulf %309, %304 : vector<16x16xf32>
    %311 = arith.addf %302, %310 : vector<16x16xf32>
    %312 = vector.broadcast %308 : f32 to vector<16x16xf32>
    %313 = arith.mulf %312, %306 : vector<16x16xf32>
    %314 = arith.addf %311, %313 : vector<16x16xf32>
    %c0_167 = arith.constant 0 : index
    %c3_168 = arith.constant 3 : index
    %c4_169 = arith.constant 4 : index
    %315 = vector.load %arg4[%c0_167, %c3_168, %c4_169] : memref<2x22x22xf32, #tpu.memory_space<vmem>>, vector<1x16x16xf32>
    %316 = vector.shape_cast %315 : vector<1x16x16xf32> to vector<16x16xf32>
    %c1_170 = arith.constant 1 : index
    %c3_171 = arith.constant 3 : index
    %c4_172 = arith.constant 4 : index
    %317 = vector.load %arg4[%c1_170, %c3_171, %c4_172] : memref<2x22x22xf32, #tpu.memory_space<vmem>>, vector<1x16x16xf32>
    %318 = vector.shape_cast %317 : vector<1x16x16xf32> to vector<16x16xf32>
    %c25 = arith.constant 25 : index
    %319 = memref.load %arg2[%c25] : memref<98xf32, #tpu.memory_space<smem>>
    %c74 = arith.constant 74 : index
    %320 = memref.load %arg2[%c74] : memref<98xf32, #tpu.memory_space<smem>>
    %321 = vector.broadcast %319 : f32 to vector<16x16xf32>
    %322 = arith.mulf %321, %316 : vector<16x16xf32>
    %323 = arith.addf %314, %322 : vector<16x16xf32>
    %324 = vector.broadcast %320 : f32 to vector<16x16xf32>
    %325 = arith.mulf %324, %318 : vector<16x16xf32>
    %326 = arith.addf %323, %325 : vector<16x16xf32>
    %c0_173 = arith.constant 0 : index
    %c3_174 = arith.constant 3 : index
    %c5_175 = arith.constant 5 : index
    %327 = vector.load %arg4[%c0_173, %c3_174, %c5_175] : memref<2x22x22xf32, #tpu.memory_space<vmem>>, vector<1x16x16xf32>
    %328 = vector.shape_cast %327 : vector<1x16x16xf32> to vector<16x16xf32>
    %c1_176 = arith.constant 1 : index
    %c3_177 = arith.constant 3 : index
    %c5_178 = arith.constant 5 : index
    %329 = vector.load %arg4[%c1_176, %c3_177, %c5_178] : memref<2x22x22xf32, #tpu.memory_space<vmem>>, vector<1x16x16xf32>
    %330 = vector.shape_cast %329 : vector<1x16x16xf32> to vector<16x16xf32>
    %c26 = arith.constant 26 : index
    %331 = memref.load %arg2[%c26] : memref<98xf32, #tpu.memory_space<smem>>
    %c75 = arith.constant 75 : index
    %332 = memref.load %arg2[%c75] : memref<98xf32, #tpu.memory_space<smem>>
    %333 = vector.broadcast %331 : f32 to vector<16x16xf32>
    %334 = arith.mulf %333, %328 : vector<16x16xf32>
    %335 = arith.addf %326, %334 : vector<16x16xf32>
    %336 = vector.broadcast %332 : f32 to vector<16x16xf32>
    %337 = arith.mulf %336, %330 : vector<16x16xf32>
    %338 = arith.addf %335, %337 : vector<16x16xf32>
    %c0_179 = arith.constant 0 : index
    %c3_180 = arith.constant 3 : index
    %c6_181 = arith.constant 6 : index
    %339 = vector.load %arg4[%c0_179, %c3_180, %c6_181] : memref<2x22x22xf32, #tpu.memory_space<vmem>>, vector<1x16x16xf32>
    %340 = vector.shape_cast %339 : vector<1x16x16xf32> to vector<16x16xf32>
    %c1_182 = arith.constant 1 : index
    %c3_183 = arith.constant 3 : index
    %c6_184 = arith.constant 6 : index
    %341 = vector.load %arg4[%c1_182, %c3_183, %c6_184] : memref<2x22x22xf32, #tpu.memory_space<vmem>>, vector<1x16x16xf32>
    %342 = vector.shape_cast %341 : vector<1x16x16xf32> to vector<16x16xf32>
    %c27 = arith.constant 27 : index
    %343 = memref.load %arg2[%c27] : memref<98xf32, #tpu.memory_space<smem>>
    %c76 = arith.constant 76 : index
    %344 = memref.load %arg2[%c76] : memref<98xf32, #tpu.memory_space<smem>>
    %345 = vector.broadcast %343 : f32 to vector<16x16xf32>
    %346 = arith.mulf %345, %340 : vector<16x16xf32>
    %347 = arith.addf %338, %346 : vector<16x16xf32>
    %348 = vector.broadcast %344 : f32 to vector<16x16xf32>
    %349 = arith.mulf %348, %342 : vector<16x16xf32>
    %350 = arith.addf %347, %349 : vector<16x16xf32>
    %c0_185 = arith.constant 0 : index
    %c4_186 = arith.constant 4 : index
    %c0_187 = arith.constant 0 : index
    %351 = vector.load %arg4[%c0_185, %c4_186, %c0_187] : memref<2x22x22xf32, #tpu.memory_space<vmem>>, vector<1x16x16xf32>
    %352 = vector.shape_cast %351 : vector<1x16x16xf32> to vector<16x16xf32>
    %c1_188 = arith.constant 1 : index
    %c4_189 = arith.constant 4 : index
    %c0_190 = arith.constant 0 : index
    %353 = vector.load %arg4[%c1_188, %c4_189, %c0_190] : memref<2x22x22xf32, #tpu.memory_space<vmem>>, vector<1x16x16xf32>
    %354 = vector.shape_cast %353 : vector<1x16x16xf32> to vector<16x16xf32>
    %c28 = arith.constant 28 : index
    %355 = memref.load %arg2[%c28] : memref<98xf32, #tpu.memory_space<smem>>
    %c77 = arith.constant 77 : index
    %356 = memref.load %arg2[%c77] : memref<98xf32, #tpu.memory_space<smem>>
    %357 = vector.broadcast %355 : f32 to vector<16x16xf32>
    %358 = arith.mulf %357, %352 : vector<16x16xf32>
    %359 = arith.addf %350, %358 : vector<16x16xf32>
    %360 = vector.broadcast %356 : f32 to vector<16x16xf32>
    %361 = arith.mulf %360, %354 : vector<16x16xf32>
    %362 = arith.addf %359, %361 : vector<16x16xf32>
    %c0_191 = arith.constant 0 : index
    %c4_192 = arith.constant 4 : index
    %c1_193 = arith.constant 1 : index
    %363 = vector.load %arg4[%c0_191, %c4_192, %c1_193] : memref<2x22x22xf32, #tpu.memory_space<vmem>>, vector<1x16x16xf32>
    %364 = vector.shape_cast %363 : vector<1x16x16xf32> to vector<16x16xf32>
    %c1_194 = arith.constant 1 : index
    %c4_195 = arith.constant 4 : index
    %c1_196 = arith.constant 1 : index
    %365 = vector.load %arg4[%c1_194, %c4_195, %c1_196] : memref<2x22x22xf32, #tpu.memory_space<vmem>>, vector<1x16x16xf32>
    %366 = vector.shape_cast %365 : vector<1x16x16xf32> to vector<16x16xf32>
    %c29 = arith.constant 29 : index
    %367 = memref.load %arg2[%c29] : memref<98xf32, #tpu.memory_space<smem>>
    %c78 = arith.constant 78 : index
    %368 = memref.load %arg2[%c78] : memref<98xf32, #tpu.memory_space<smem>>
    %369 = vector.broadcast %367 : f32 to vector<16x16xf32>
    %370 = arith.mulf %369, %364 : vector<16x16xf32>
    %371 = arith.addf %362, %370 : vector<16x16xf32>
    %372 = vector.broadcast %368 : f32 to vector<16x16xf32>
    %373 = arith.mulf %372, %366 : vector<16x16xf32>
    %374 = arith.addf %371, %373 : vector<16x16xf32>
    %c0_197 = arith.constant 0 : index
    %c4_198 = arith.constant 4 : index
    %c2_199 = arith.constant 2 : index
    %375 = vector.load %arg4[%c0_197, %c4_198, %c2_199] : memref<2x22x22xf32, #tpu.memory_space<vmem>>, vector<1x16x16xf32>
    %376 = vector.shape_cast %375 : vector<1x16x16xf32> to vector<16x16xf32>
    %c1_200 = arith.constant 1 : index
    %c4_201 = arith.constant 4 : index
    %c2_202 = arith.constant 2 : index
    %377 = vector.load %arg4[%c1_200, %c4_201, %c2_202] : memref<2x22x22xf32, #tpu.memory_space<vmem>>, vector<1x16x16xf32>
    %378 = vector.shape_cast %377 : vector<1x16x16xf32> to vector<16x16xf32>
    %c30 = arith.constant 30 : index
    %379 = memref.load %arg2[%c30] : memref<98xf32, #tpu.memory_space<smem>>
    %c79 = arith.constant 79 : index
    %380 = memref.load %arg2[%c79] : memref<98xf32, #tpu.memory_space<smem>>
    %381 = vector.broadcast %379 : f32 to vector<16x16xf32>
    %382 = arith.mulf %381, %376 : vector<16x16xf32>
    %383 = arith.addf %374, %382 : vector<16x16xf32>
    %384 = vector.broadcast %380 : f32 to vector<16x16xf32>
    %385 = arith.mulf %384, %378 : vector<16x16xf32>
    %386 = arith.addf %383, %385 : vector<16x16xf32>
    %c0_203 = arith.constant 0 : index
    %c4_204 = arith.constant 4 : index
    %c3_205 = arith.constant 3 : index
    %387 = vector.load %arg4[%c0_203, %c4_204, %c3_205] : memref<2x22x22xf32, #tpu.memory_space<vmem>>, vector<1x16x16xf32>
    %388 = vector.shape_cast %387 : vector<1x16x16xf32> to vector<16x16xf32>
    %c1_206 = arith.constant 1 : index
    %c4_207 = arith.constant 4 : index
    %c3_208 = arith.constant 3 : index
    %389 = vector.load %arg4[%c1_206, %c4_207, %c3_208] : memref<2x22x22xf32, #tpu.memory_space<vmem>>, vector<1x16x16xf32>
    %390 = vector.shape_cast %389 : vector<1x16x16xf32> to vector<16x16xf32>
    %c31 = arith.constant 31 : index
    %391 = memref.load %arg2[%c31] : memref<98xf32, #tpu.memory_space<smem>>
    %c80 = arith.constant 80 : index
    %392 = memref.load %arg2[%c80] : memref<98xf32, #tpu.memory_space<smem>>
    %393 = vector.broadcast %391 : f32 to vector<16x16xf32>
    %394 = arith.mulf %393, %388 : vector<16x16xf32>
    %395 = arith.addf %386, %394 : vector<16x16xf32>
    %396 = vector.broadcast %392 : f32 to vector<16x16xf32>
    %397 = arith.mulf %396, %390 : vector<16x16xf32>
    %398 = arith.addf %395, %397 : vector<16x16xf32>
    %c0_209 = arith.constant 0 : index
    %c4_210 = arith.constant 4 : index
    %c4_211 = arith.constant 4 : index
    %399 = vector.load %arg4[%c0_209, %c4_210, %c4_211] : memref<2x22x22xf32, #tpu.memory_space<vmem>>, vector<1x16x16xf32>
    %400 = vector.shape_cast %399 : vector<1x16x16xf32> to vector<16x16xf32>
    %c1_212 = arith.constant 1 : index
    %c4_213 = arith.constant 4 : index
    %c4_214 = arith.constant 4 : index
    %401 = vector.load %arg4[%c1_212, %c4_213, %c4_214] : memref<2x22x22xf32, #tpu.memory_space<vmem>>, vector<1x16x16xf32>
    %402 = vector.shape_cast %401 : vector<1x16x16xf32> to vector<16x16xf32>
    %c32 = arith.constant 32 : index
    %403 = memref.load %arg2[%c32] : memref<98xf32, #tpu.memory_space<smem>>
    %c81 = arith.constant 81 : index
    %404 = memref.load %arg2[%c81] : memref<98xf32, #tpu.memory_space<smem>>
    %405 = vector.broadcast %403 : f32 to vector<16x16xf32>
    %406 = arith.mulf %405, %400 : vector<16x16xf32>
    %407 = arith.addf %398, %406 : vector<16x16xf32>
    %408 = vector.broadcast %404 : f32 to vector<16x16xf32>
    %409 = arith.mulf %408, %402 : vector<16x16xf32>
    %410 = arith.addf %407, %409 : vector<16x16xf32>
    %c0_215 = arith.constant 0 : index
    %c4_216 = arith.constant 4 : index
    %c5_217 = arith.constant 5 : index
    %411 = vector.load %arg4[%c0_215, %c4_216, %c5_217] : memref<2x22x22xf32, #tpu.memory_space<vmem>>, vector<1x16x16xf32>
    %412 = vector.shape_cast %411 : vector<1x16x16xf32> to vector<16x16xf32>
    %c1_218 = arith.constant 1 : index
    %c4_219 = arith.constant 4 : index
    %c5_220 = arith.constant 5 : index
    %413 = vector.load %arg4[%c1_218, %c4_219, %c5_220] : memref<2x22x22xf32, #tpu.memory_space<vmem>>, vector<1x16x16xf32>
    %414 = vector.shape_cast %413 : vector<1x16x16xf32> to vector<16x16xf32>
    %c33 = arith.constant 33 : index
    %415 = memref.load %arg2[%c33] : memref<98xf32, #tpu.memory_space<smem>>
    %c82 = arith.constant 82 : index
    %416 = memref.load %arg2[%c82] : memref<98xf32, #tpu.memory_space<smem>>
    %417 = vector.broadcast %415 : f32 to vector<16x16xf32>
    %418 = arith.mulf %417, %412 : vector<16x16xf32>
    %419 = arith.addf %410, %418 : vector<16x16xf32>
    %420 = vector.broadcast %416 : f32 to vector<16x16xf32>
    %421 = arith.mulf %420, %414 : vector<16x16xf32>
    %422 = arith.addf %419, %421 : vector<16x16xf32>
    %c0_221 = arith.constant 0 : index
    %c4_222 = arith.constant 4 : index
    %c6_223 = arith.constant 6 : index
    %423 = vector.load %arg4[%c0_221, %c4_222, %c6_223] : memref<2x22x22xf32, #tpu.memory_space<vmem>>, vector<1x16x16xf32>
    %424 = vector.shape_cast %423 : vector<1x16x16xf32> to vector<16x16xf32>
    %c1_224 = arith.constant 1 : index
    %c4_225 = arith.constant 4 : index
    %c6_226 = arith.constant 6 : index
    %425 = vector.load %arg4[%c1_224, %c4_225, %c6_226] : memref<2x22x22xf32, #tpu.memory_space<vmem>>, vector<1x16x16xf32>
    %426 = vector.shape_cast %425 : vector<1x16x16xf32> to vector<16x16xf32>
    %c34 = arith.constant 34 : index
    %427 = memref.load %arg2[%c34] : memref<98xf32, #tpu.memory_space<smem>>
    %c83 = arith.constant 83 : index
    %428 = memref.load %arg2[%c83] : memref<98xf32, #tpu.memory_space<smem>>
    %429 = vector.broadcast %427 : f32 to vector<16x16xf32>
    %430 = arith.mulf %429, %424 : vector<16x16xf32>
    %431 = arith.addf %422, %430 : vector<16x16xf32>
    %432 = vector.broadcast %428 : f32 to vector<16x16xf32>
    %433 = arith.mulf %432, %426 : vector<16x16xf32>
    %434 = arith.addf %431, %433 : vector<16x16xf32>
    %c0_227 = arith.constant 0 : index
    %c5_228 = arith.constant 5 : index
    %c0_229 = arith.constant 0 : index
    %435 = vector.load %arg4[%c0_227, %c5_228, %c0_229] : memref<2x22x22xf32, #tpu.memory_space<vmem>>, vector<1x16x16xf32>
    %436 = vector.shape_cast %435 : vector<1x16x16xf32> to vector<16x16xf32>
    %c1_230 = arith.constant 1 : index
    %c5_231 = arith.constant 5 : index
    %c0_232 = arith.constant 0 : index
    %437 = vector.load %arg4[%c1_230, %c5_231, %c0_232] : memref<2x22x22xf32, #tpu.memory_space<vmem>>, vector<1x16x16xf32>
    %438 = vector.shape_cast %437 : vector<1x16x16xf32> to vector<16x16xf32>
    %c35 = arith.constant 35 : index
    %439 = memref.load %arg2[%c35] : memref<98xf32, #tpu.memory_space<smem>>
    %c84 = arith.constant 84 : index
    %440 = memref.load %arg2[%c84] : memref<98xf32, #tpu.memory_space<smem>>
    %441 = vector.broadcast %439 : f32 to vector<16x16xf32>
    %442 = arith.mulf %441, %436 : vector<16x16xf32>
    %443 = arith.addf %434, %442 : vector<16x16xf32>
    %444 = vector.broadcast %440 : f32 to vector<16x16xf32>
    %445 = arith.mulf %444, %438 : vector<16x16xf32>
    %446 = arith.addf %443, %445 : vector<16x16xf32>
    %c0_233 = arith.constant 0 : index
    %c5_234 = arith.constant 5 : index
    %c1_235 = arith.constant 1 : index
    %447 = vector.load %arg4[%c0_233, %c5_234, %c1_235] : memref<2x22x22xf32, #tpu.memory_space<vmem>>, vector<1x16x16xf32>
    %448 = vector.shape_cast %447 : vector<1x16x16xf32> to vector<16x16xf32>
    %c1_236 = arith.constant 1 : index
    %c5_237 = arith.constant 5 : index
    %c1_238 = arith.constant 1 : index
    %449 = vector.load %arg4[%c1_236, %c5_237, %c1_238] : memref<2x22x22xf32, #tpu.memory_space<vmem>>, vector<1x16x16xf32>
    %450 = vector.shape_cast %449 : vector<1x16x16xf32> to vector<16x16xf32>
    %c36 = arith.constant 36 : index
    %451 = memref.load %arg2[%c36] : memref<98xf32, #tpu.memory_space<smem>>
    %c85 = arith.constant 85 : index
    %452 = memref.load %arg2[%c85] : memref<98xf32, #tpu.memory_space<smem>>
    %453 = vector.broadcast %451 : f32 to vector<16x16xf32>
    %454 = arith.mulf %453, %448 : vector<16x16xf32>
    %455 = arith.addf %446, %454 : vector<16x16xf32>
    %456 = vector.broadcast %452 : f32 to vector<16x16xf32>
    %457 = arith.mulf %456, %450 : vector<16x16xf32>
    %458 = arith.addf %455, %457 : vector<16x16xf32>
    %c0_239 = arith.constant 0 : index
    %c5_240 = arith.constant 5 : index
    %c2_241 = arith.constant 2 : index
    %459 = vector.load %arg4[%c0_239, %c5_240, %c2_241] : memref<2x22x22xf32, #tpu.memory_space<vmem>>, vector<1x16x16xf32>
    %460 = vector.shape_cast %459 : vector<1x16x16xf32> to vector<16x16xf32>
    %c1_242 = arith.constant 1 : index
    %c5_243 = arith.constant 5 : index
    %c2_244 = arith.constant 2 : index
    %461 = vector.load %arg4[%c1_242, %c5_243, %c2_244] : memref<2x22x22xf32, #tpu.memory_space<vmem>>, vector<1x16x16xf32>
    %462 = vector.shape_cast %461 : vector<1x16x16xf32> to vector<16x16xf32>
    %c37 = arith.constant 37 : index
    %463 = memref.load %arg2[%c37] : memref<98xf32, #tpu.memory_space<smem>>
    %c86 = arith.constant 86 : index
    %464 = memref.load %arg2[%c86] : memref<98xf32, #tpu.memory_space<smem>>
    %465 = vector.broadcast %463 : f32 to vector<16x16xf32>
    %466 = arith.mulf %465, %460 : vector<16x16xf32>
    %467 = arith.addf %458, %466 : vector<16x16xf32>
    %468 = vector.broadcast %464 : f32 to vector<16x16xf32>
    %469 = arith.mulf %468, %462 : vector<16x16xf32>
    %470 = arith.addf %467, %469 : vector<16x16xf32>
    %c0_245 = arith.constant 0 : index
    %c5_246 = arith.constant 5 : index
    %c3_247 = arith.constant 3 : index
    %471 = vector.load %arg4[%c0_245, %c5_246, %c3_247] : memref<2x22x22xf32, #tpu.memory_space<vmem>>, vector<1x16x16xf32>
    %472 = vector.shape_cast %471 : vector<1x16x16xf32> to vector<16x16xf32>
    %c1_248 = arith.constant 1 : index
    %c5_249 = arith.constant 5 : index
    %c3_250 = arith.constant 3 : index
    %473 = vector.load %arg4[%c1_248, %c5_249, %c3_250] : memref<2x22x22xf32, #tpu.memory_space<vmem>>, vector<1x16x16xf32>
    %474 = vector.shape_cast %473 : vector<1x16x16xf32> to vector<16x16xf32>
    %c38 = arith.constant 38 : index
    %475 = memref.load %arg2[%c38] : memref<98xf32, #tpu.memory_space<smem>>
    %c87 = arith.constant 87 : index
    %476 = memref.load %arg2[%c87] : memref<98xf32, #tpu.memory_space<smem>>
    %477 = vector.broadcast %475 : f32 to vector<16x16xf32>
    %478 = arith.mulf %477, %472 : vector<16x16xf32>
    %479 = arith.addf %470, %478 : vector<16x16xf32>
    %480 = vector.broadcast %476 : f32 to vector<16x16xf32>
    %481 = arith.mulf %480, %474 : vector<16x16xf32>
    %482 = arith.addf %479, %481 : vector<16x16xf32>
    %c0_251 = arith.constant 0 : index
    %c5_252 = arith.constant 5 : index
    %c4_253 = arith.constant 4 : index
    %483 = vector.load %arg4[%c0_251, %c5_252, %c4_253] : memref<2x22x22xf32, #tpu.memory_space<vmem>>, vector<1x16x16xf32>
    %484 = vector.shape_cast %483 : vector<1x16x16xf32> to vector<16x16xf32>
    %c1_254 = arith.constant 1 : index
    %c5_255 = arith.constant 5 : index
    %c4_256 = arith.constant 4 : index
    %485 = vector.load %arg4[%c1_254, %c5_255, %c4_256] : memref<2x22x22xf32, #tpu.memory_space<vmem>>, vector<1x16x16xf32>
    %486 = vector.shape_cast %485 : vector<1x16x16xf32> to vector<16x16xf32>
    %c39 = arith.constant 39 : index
    %487 = memref.load %arg2[%c39] : memref<98xf32, #tpu.memory_space<smem>>
    %c88 = arith.constant 88 : index
    %488 = memref.load %arg2[%c88] : memref<98xf32, #tpu.memory_space<smem>>
    %489 = vector.broadcast %487 : f32 to vector<16x16xf32>
    %490 = arith.mulf %489, %484 : vector<16x16xf32>
    %491 = arith.addf %482, %490 : vector<16x16xf32>
    %492 = vector.broadcast %488 : f32 to vector<16x16xf32>
    %493 = arith.mulf %492, %486 : vector<16x16xf32>
    %494 = arith.addf %491, %493 : vector<16x16xf32>
    %c0_257 = arith.constant 0 : index
    %c5_258 = arith.constant 5 : index
    %c5_259 = arith.constant 5 : index
    %495 = vector.load %arg4[%c0_257, %c5_258, %c5_259] : memref<2x22x22xf32, #tpu.memory_space<vmem>>, vector<1x16x16xf32>
    %496 = vector.shape_cast %495 : vector<1x16x16xf32> to vector<16x16xf32>
    %c1_260 = arith.constant 1 : index
    %c5_261 = arith.constant 5 : index
    %c5_262 = arith.constant 5 : index
    %497 = vector.load %arg4[%c1_260, %c5_261, %c5_262] : memref<2x22x22xf32, #tpu.memory_space<vmem>>, vector<1x16x16xf32>
    %498 = vector.shape_cast %497 : vector<1x16x16xf32> to vector<16x16xf32>
    %c40 = arith.constant 40 : index
    %499 = memref.load %arg2[%c40] : memref<98xf32, #tpu.memory_space<smem>>
    %c89 = arith.constant 89 : index
    %500 = memref.load %arg2[%c89] : memref<98xf32, #tpu.memory_space<smem>>
    %501 = vector.broadcast %499 : f32 to vector<16x16xf32>
    %502 = arith.mulf %501, %496 : vector<16x16xf32>
    %503 = arith.addf %494, %502 : vector<16x16xf32>
    %504 = vector.broadcast %500 : f32 to vector<16x16xf32>
    %505 = arith.mulf %504, %498 : vector<16x16xf32>
    %506 = arith.addf %503, %505 : vector<16x16xf32>
    %c0_263 = arith.constant 0 : index
    %c5_264 = arith.constant 5 : index
    %c6_265 = arith.constant 6 : index
    %507 = vector.load %arg4[%c0_263, %c5_264, %c6_265] : memref<2x22x22xf32, #tpu.memory_space<vmem>>, vector<1x16x16xf32>
    %508 = vector.shape_cast %507 : vector<1x16x16xf32> to vector<16x16xf32>
    %c1_266 = arith.constant 1 : index
    %c5_267 = arith.constant 5 : index
    %c6_268 = arith.constant 6 : index
    %509 = vector.load %arg4[%c1_266, %c5_267, %c6_268] : memref<2x22x22xf32, #tpu.memory_space<vmem>>, vector<1x16x16xf32>
    %510 = vector.shape_cast %509 : vector<1x16x16xf32> to vector<16x16xf32>
    %c41 = arith.constant 41 : index
    %511 = memref.load %arg2[%c41] : memref<98xf32, #tpu.memory_space<smem>>
    %c90 = arith.constant 90 : index
    %512 = memref.load %arg2[%c90] : memref<98xf32, #tpu.memory_space<smem>>
    %513 = vector.broadcast %511 : f32 to vector<16x16xf32>
    %514 = arith.mulf %513, %508 : vector<16x16xf32>
    %515 = arith.addf %506, %514 : vector<16x16xf32>
    %516 = vector.broadcast %512 : f32 to vector<16x16xf32>
    %517 = arith.mulf %516, %510 : vector<16x16xf32>
    %518 = arith.addf %515, %517 : vector<16x16xf32>
    %c0_269 = arith.constant 0 : index
    %c6_270 = arith.constant 6 : index
    %c0_271 = arith.constant 0 : index
    %519 = vector.load %arg4[%c0_269, %c6_270, %c0_271] : memref<2x22x22xf32, #tpu.memory_space<vmem>>, vector<1x16x16xf32>
    %520 = vector.shape_cast %519 : vector<1x16x16xf32> to vector<16x16xf32>
    %c1_272 = arith.constant 1 : index
    %c6_273 = arith.constant 6 : index
    %c0_274 = arith.constant 0 : index
    %521 = vector.load %arg4[%c1_272, %c6_273, %c0_274] : memref<2x22x22xf32, #tpu.memory_space<vmem>>, vector<1x16x16xf32>
    %522 = vector.shape_cast %521 : vector<1x16x16xf32> to vector<16x16xf32>
    %c42 = arith.constant 42 : index
    %523 = memref.load %arg2[%c42] : memref<98xf32, #tpu.memory_space<smem>>
    %c91 = arith.constant 91 : index
    %524 = memref.load %arg2[%c91] : memref<98xf32, #tpu.memory_space<smem>>
    %525 = vector.broadcast %523 : f32 to vector<16x16xf32>
    %526 = arith.mulf %525, %520 : vector<16x16xf32>
    %527 = arith.addf %518, %526 : vector<16x16xf32>
    %528 = vector.broadcast %524 : f32 to vector<16x16xf32>
    %529 = arith.mulf %528, %522 : vector<16x16xf32>
    %530 = arith.addf %527, %529 : vector<16x16xf32>
    %c0_275 = arith.constant 0 : index
    %c6_276 = arith.constant 6 : index
    %c1_277 = arith.constant 1 : index
    %531 = vector.load %arg4[%c0_275, %c6_276, %c1_277] : memref<2x22x22xf32, #tpu.memory_space<vmem>>, vector<1x16x16xf32>
    %532 = vector.shape_cast %531 : vector<1x16x16xf32> to vector<16x16xf32>
    %c1_278 = arith.constant 1 : index
    %c6_279 = arith.constant 6 : index
    %c1_280 = arith.constant 1 : index
    %533 = vector.load %arg4[%c1_278, %c6_279, %c1_280] : memref<2x22x22xf32, #tpu.memory_space<vmem>>, vector<1x16x16xf32>
    %534 = vector.shape_cast %533 : vector<1x16x16xf32> to vector<16x16xf32>
    %c43 = arith.constant 43 : index
    %535 = memref.load %arg2[%c43] : memref<98xf32, #tpu.memory_space<smem>>
    %c92 = arith.constant 92 : index
    %536 = memref.load %arg2[%c92] : memref<98xf32, #tpu.memory_space<smem>>
    %537 = vector.broadcast %535 : f32 to vector<16x16xf32>
    %538 = arith.mulf %537, %532 : vector<16x16xf32>
    %539 = arith.addf %530, %538 : vector<16x16xf32>
    %540 = vector.broadcast %536 : f32 to vector<16x16xf32>
    %541 = arith.mulf %540, %534 : vector<16x16xf32>
    %542 = arith.addf %539, %541 : vector<16x16xf32>
    %c0_281 = arith.constant 0 : index
    %c6_282 = arith.constant 6 : index
    %c2_283 = arith.constant 2 : index
    %543 = vector.load %arg4[%c0_281, %c6_282, %c2_283] : memref<2x22x22xf32, #tpu.memory_space<vmem>>, vector<1x16x16xf32>
    %544 = vector.shape_cast %543 : vector<1x16x16xf32> to vector<16x16xf32>
    %c1_284 = arith.constant 1 : index
    %c6_285 = arith.constant 6 : index
    %c2_286 = arith.constant 2 : index
    %545 = vector.load %arg4[%c1_284, %c6_285, %c2_286] : memref<2x22x22xf32, #tpu.memory_space<vmem>>, vector<1x16x16xf32>
    %546 = vector.shape_cast %545 : vector<1x16x16xf32> to vector<16x16xf32>
    %c44 = arith.constant 44 : index
    %547 = memref.load %arg2[%c44] : memref<98xf32, #tpu.memory_space<smem>>
    %c93 = arith.constant 93 : index
    %548 = memref.load %arg2[%c93] : memref<98xf32, #tpu.memory_space<smem>>
    %549 = vector.broadcast %547 : f32 to vector<16x16xf32>
    %550 = arith.mulf %549, %544 : vector<16x16xf32>
    %551 = arith.addf %542, %550 : vector<16x16xf32>
    %552 = vector.broadcast %548 : f32 to vector<16x16xf32>
    %553 = arith.mulf %552, %546 : vector<16x16xf32>
    %554 = arith.addf %551, %553 : vector<16x16xf32>
    %c0_287 = arith.constant 0 : index
    %c6_288 = arith.constant 6 : index
    %c3_289 = arith.constant 3 : index
    %555 = vector.load %arg4[%c0_287, %c6_288, %c3_289] : memref<2x22x22xf32, #tpu.memory_space<vmem>>, vector<1x16x16xf32>
    %556 = vector.shape_cast %555 : vector<1x16x16xf32> to vector<16x16xf32>
    %c1_290 = arith.constant 1 : index
    %c6_291 = arith.constant 6 : index
    %c3_292 = arith.constant 3 : index
    %557 = vector.load %arg4[%c1_290, %c6_291, %c3_292] : memref<2x22x22xf32, #tpu.memory_space<vmem>>, vector<1x16x16xf32>
    %558 = vector.shape_cast %557 : vector<1x16x16xf32> to vector<16x16xf32>
    %c45 = arith.constant 45 : index
    %559 = memref.load %arg2[%c45] : memref<98xf32, #tpu.memory_space<smem>>
    %c94 = arith.constant 94 : index
    %560 = memref.load %arg2[%c94] : memref<98xf32, #tpu.memory_space<smem>>
    %561 = vector.broadcast %559 : f32 to vector<16x16xf32>
    %562 = arith.mulf %561, %556 : vector<16x16xf32>
    %563 = arith.addf %554, %562 : vector<16x16xf32>
    %564 = vector.broadcast %560 : f32 to vector<16x16xf32>
    %565 = arith.mulf %564, %558 : vector<16x16xf32>
    %566 = arith.addf %563, %565 : vector<16x16xf32>
    %c0_293 = arith.constant 0 : index
    %c6_294 = arith.constant 6 : index
    %c4_295 = arith.constant 4 : index
    %567 = vector.load %arg4[%c0_293, %c6_294, %c4_295] : memref<2x22x22xf32, #tpu.memory_space<vmem>>, vector<1x16x16xf32>
    %568 = vector.shape_cast %567 : vector<1x16x16xf32> to vector<16x16xf32>
    %c1_296 = arith.constant 1 : index
    %c6_297 = arith.constant 6 : index
    %c4_298 = arith.constant 4 : index
    %569 = vector.load %arg4[%c1_296, %c6_297, %c4_298] : memref<2x22x22xf32, #tpu.memory_space<vmem>>, vector<1x16x16xf32>
    %570 = vector.shape_cast %569 : vector<1x16x16xf32> to vector<16x16xf32>
    %c46 = arith.constant 46 : index
    %571 = memref.load %arg2[%c46] : memref<98xf32, #tpu.memory_space<smem>>
    %c95 = arith.constant 95 : index
    %572 = memref.load %arg2[%c95] : memref<98xf32, #tpu.memory_space<smem>>
    %573 = vector.broadcast %571 : f32 to vector<16x16xf32>
    %574 = arith.mulf %573, %568 : vector<16x16xf32>
    %575 = arith.addf %566, %574 : vector<16x16xf32>
    %576 = vector.broadcast %572 : f32 to vector<16x16xf32>
    %577 = arith.mulf %576, %570 : vector<16x16xf32>
    %578 = arith.addf %575, %577 : vector<16x16xf32>
    %c0_299 = arith.constant 0 : index
    %c6_300 = arith.constant 6 : index
    %c5_301 = arith.constant 5 : index
    %579 = vector.load %arg4[%c0_299, %c6_300, %c5_301] : memref<2x22x22xf32, #tpu.memory_space<vmem>>, vector<1x16x16xf32>
    %580 = vector.shape_cast %579 : vector<1x16x16xf32> to vector<16x16xf32>
    %c1_302 = arith.constant 1 : index
    %c6_303 = arith.constant 6 : index
    %c5_304 = arith.constant 5 : index
    %581 = vector.load %arg4[%c1_302, %c6_303, %c5_304] : memref<2x22x22xf32, #tpu.memory_space<vmem>>, vector<1x16x16xf32>
    %582 = vector.shape_cast %581 : vector<1x16x16xf32> to vector<16x16xf32>
    %c47 = arith.constant 47 : index
    %583 = memref.load %arg2[%c47] : memref<98xf32, #tpu.memory_space<smem>>
    %c96 = arith.constant 96 : index
    %584 = memref.load %arg2[%c96] : memref<98xf32, #tpu.memory_space<smem>>
    %585 = vector.broadcast %583 : f32 to vector<16x16xf32>
    %586 = arith.mulf %585, %580 : vector<16x16xf32>
    %587 = arith.addf %578, %586 : vector<16x16xf32>
    %588 = vector.broadcast %584 : f32 to vector<16x16xf32>
    %589 = arith.mulf %588, %582 : vector<16x16xf32>
    %590 = arith.addf %587, %589 : vector<16x16xf32>
    %c0_305 = arith.constant 0 : index
    %c6_306 = arith.constant 6 : index
    %c6_307 = arith.constant 6 : index
    %591 = vector.load %arg4[%c0_305, %c6_306, %c6_307] : memref<2x22x22xf32, #tpu.memory_space<vmem>>, vector<1x16x16xf32>
    %592 = vector.shape_cast %591 : vector<1x16x16xf32> to vector<16x16xf32>
    %c1_308 = arith.constant 1 : index
    %c6_309 = arith.constant 6 : index
    %c6_310 = arith.constant 6 : index
    %593 = vector.load %arg4[%c1_308, %c6_309, %c6_310] : memref<2x22x22xf32, #tpu.memory_space<vmem>>, vector<1x16x16xf32>
    %594 = vector.shape_cast %593 : vector<1x16x16xf32> to vector<16x16xf32>
    %c48 = arith.constant 48 : index
    %595 = memref.load %arg2[%c48] : memref<98xf32, #tpu.memory_space<smem>>
    %c97 = arith.constant 97 : index
    %596 = memref.load %arg2[%c97] : memref<98xf32, #tpu.memory_space<smem>>
    %597 = vector.broadcast %595 : f32 to vector<16x16xf32>
    %598 = arith.mulf %597, %592 : vector<16x16xf32>
    %599 = arith.addf %590, %598 : vector<16x16xf32>
    %600 = vector.broadcast %596 : f32 to vector<16x16xf32>
    %601 = arith.mulf %600, %594 : vector<16x16xf32>
    %602 = arith.addf %599, %601 : vector<16x16xf32>
    %603 = arith.negf %602 : vector<16x16xf32>
    %604 = math.exp %603 : vector<16x16xf32>
    %cst_311 = arith.constant 1.000000e+00 : f32
    %605 = vector.broadcast %cst_311 : f32 to vector<16x16xf32>
    %606 = arith.addf %605, %604 : vector<16x16xf32>
    %607 = arith.divf %605, %606 : vector<16x16xf32>
    %608 = vector.shape_cast %607 : vector<16x16xf32> to vector<1x16x16xf32>
    %609 = vector.broadcast %608 : vector<1x16x16xf32> to vector<4x16x16xf32>
    %610 = arith.mulf %1, %609 : vector<4x16x16xf32>
    %c0_312 = arith.constant 0 : index
    %c0_313 = arith.constant 0 : index
    %c0_314 = arith.constant 0 : index
    %c0_315 = arith.constant 0 : index
    %611 = vector.load %arg3[%c0_312, %c0_313, %c0_314, %c0_315] : memref<1x4x16x16xf32, #tpu.memory_space<vmem>>, vector<1x4x16x16xf32>
    %612 = vector.shape_cast %611 : vector<1x4x16x16xf32> to vector<4x16x16xf32>
    %613 = vector.shape_cast %610 : vector<4x16x16xf32> to vector<1x4x16x16xf32>
    tpu.vector_store %arg3[%c0_312, %c0_313, %c0_314, %c0_315], %613 {strides = array<i32>} : memref<1x4x16x16xf32, #tpu.memory_space<vmem>>, vector<1x4x16x16xf32>,
    return
  }
  func.func @transform_0(%arg0: i32) -> (i32, i32, i32, i32) {
    %c0_i32 = arith.constant 0 : i32
    %c0_i32_0 = arith.constant 0 : i32
    %c0_i32_1 = arith.constant 0 : i32
    %c0_i32_2 = arith.constant 0 : i32
    return %arg0, %c0_i32, %c0_i32_0, %c0_i32_1 : i32, i32, i32, i32
  }
  func.func @transform_1(%arg0: i32) -> i32 {
    %c0_i32 = arith.constant 0 : i32
    %c0_i32_0 = arith.constant 0 : i32
    return %c0_i32 : i32
  }
  func.func @transform_2(%arg0: i32) -> (i32, i32, i32, i32) {
    %c0_i32 = arith.constant 0 : i32
    %c0_i32_0 = arith.constant 0 : i32
    %c0_i32_1 = arith.constant 0 : i32
    %c0_i32_2 = arith.constant 0 : i32
    return %arg0, %c0_i32, %c0_i32_0, %c0_i32_1 : i32, i32, i32, i32
  }
}

</mosaic_0001>

<bundles_post_ra>
// kernel: tpu_custom_call.1
= control target key start
LH: loop header
LB: loop body
LE: loop exit
PB: predicated region body
PF: predicated region fallthrough
CT: control target
= control target key end

     0   :  { %7 = vsyncpa [#allocation4], 0  ;;  %s2946_s0 = inlined_call_operand.hbm [shape: f32[2,4,16,16], index: 0, kind: input, shape index: {}]   ;;  %s2947_s1 = inlined_call_operand.hbm [shape: f32[98], index: 1, kind: input, shape index: {}]   ;;  %s2948_s2 = inlined_call_operand.hbm [shape: f32[2,4,16,16], index: 2, kind: output, shape index: {}]  }
   0x1   :  { %9 = vsyncpa [#allocation4 + $0x1], 0 }
   0x2   :  { %10 = vsyncpa [#allocation6], 0 }
   0x3   :  { %11 = vsyncpa [#allocation5], 0 }
   0x4   :  { %13 = vsyncpa [#allocation5 + $0x1], 0  ;;  %s2048_s9 = smov 0   ;;  %s2050_s10 = smov 0  }
   0x5   :  { %s2052_s11 = smov 0   ;;  %s2054_s12 = smov 0  }
   0x6 LB: > { %s2069_s13 = sadd.s32 4294967295, %s2017_s12   ;;  %s1697_s14 = sadd.s32 4294967294, %s2017_s12   ;;  %s2017_s12 = sphi %s2054_s12, %s2959_s12   ;;  %s2013_s11 = sphi %s2052_s11, %s2958_s11   ;;  %s2009_s10 = sphi %s2050_s10, %s2957_s10   ;;  %s2005_s9 = sphi %s2048_s9, %s2956_s9  }
   0x7   : > { %s2073_s15 = sadd.s32 1, %s2017_s12   ;;  %s26_s16 = sadd.s32 1, %s2013_s11 }
   0x8   : > { %s23_s17 = ssub.s32 %s2017_s12, %s2073_s15  ;;  %p33_p0 = scmp.ne.s32.totalorder %s2013_s11, %s2009_s10 }
   0x9   : > { %p24_p1 = scmp.eq.s32.totalorder %s23_s17, 0  ;;  %p34_p2 = scmp.eq.s32.totalorder %s2017_s12, 0 }
   0xa   : > { %p39_p3 = scmp.ne.s32.totalorder %s2009_s10, %s2005_s9  ;;  %p40_p4 = scmp.eq.s32.totalorder %s2069_s13, 0 }
   0xb   : > { %s2085_s18 = scalar_select %p24_p1, %s2013_s11, %s26_s16  }
   0xc   : > { %p2087_p5 = por %p34_p2, %p33_p0  ;;  %p2093_p6 = por %p40_p4, %p39_p3 }
   0xd   : > { %p84_p7 = scmp.eq.s32.totalorder %s2069_s13, 1  ;;  %p90_p8 = scmp.eq.s32.totalorder %s1697_s14, 1 }
   0xe   : > { %p1698_p9 = scmp.ge.s32.totalorder %s2017_s12, 1  ;;  %p97_p10 = scmp.lt.s32.totalorder %s2017_s12, 3 }
   0xf   : > { %p2100_p11 = por %p84_p7, %p33_p0  ;;  %p2104_p12 = por %p90_p8, %p39_p3 }
  0x10   : > { %p2108_p13 = pnand %p1698_p9, %p97_p10  ;;  %s109_s26 = sshll.u32 %s2947_s1, 4  ;;  %s110_s26 = int_to_ptr.hbm [resolvable:$true] %s109_s26 }
  0x11   : > { %p1835_p2 = scmp.lt.s32.totalorder %s2017_s12, 2  ;;  %s120_s27 = sand.u32 1, %s2013_s11  }
  0x12   : > { %p1822_p1 = pneg %p2108_p13  ;;  %s1701_s29 = sshll.u32 %s120_s27, 6 }
  0x13   : > { %p2124_p3 = pnand %p1835_p2, %p2087_p5  ;;  %s2019_s30 = smov [#allocation7]  }
  0x14   : > { %p1823_p7 = pnand %p1822_p1, %p40_p4  ;;  %s1812_s3 = sshll.u32 %s2017_s12, 6 }
  0x15   : > { %s124_s4 = scalar_lea.vmem [#allocation3], %s1701_s29  ;;  %s129_s8 = scalar_lea.hbm %s2946_s0, %s1812_s3 }
  0x16   : > { %1825 = dma.hbm_to_smem (!%p1823_p7), %s110_s26, 16, %s2019_s30, [#allocation6]  }
  0x17   : > { %s132_s5 = sshll.u32 %s124_s4, 4  ;;  %s130_s14 = sshll.u32 %s129_s8, 4  ;;  %s133_s5 = int_to_ptr.vmem [resolvable:$true] %s132_s5  ;;  %s131_s14 = int_to_ptr.hbm [resolvable:$true] %s130_s14 }
  0x18   : > { %s121_s16 = scalar_lea.sflag [#allocation4], %s120_s27  ;;  %s1917_s17 = sshra.s32 %s131_s14, 4  ;;  %s1918_s17 = int_to_ptr.hbm [resolvable:$true] %s1917_s17 }
  0x19   : > { %s1919_s19 = scalar_lea.hbm %s1918_s17, 64  ;;  %p1921_p8 = pneg %p2124_p3 }
  0x1a   : > { %p1920_p5 = scmp.ne.s32.totalorder %s1918_s17, %s1919_s19  ;;  %s1924_s26 = scalar_lea.hbm %s2946_s0, 128 }
  0x1b   : > { %p1925_p1 = scmp.lt.s32.totalorder %s1918_s17, %s2946_s0  ;;  %p1926_p2 = scmp.lt.s32.totalorder %s1924_s26, %s1919_s19 }
  0x1c   : > { %p1922_p9 = pnand %p1921_p8, %p1920_p5 }
  0x1d   : > { %p1927_p7 = por %p1926_p2, %p1925_p1 }
  0x1e   : > { %p1923_p10 = pneg %p1922_p9 }
  0x20   : > { %p1928_p0 = pnand %p1927_p7, %p1923_p10 }
  0x22   : > { %1931 = shalt.err (!%p1928_p0)
}
  0x23   : > { %s2020_s27 = smov 128   ;;  %s2021_s3 = smov 8  }
  0x24   : > { %1829 = dma.hbm_to_vmem [thread:$0]  (!%p2124_p3), %s131_s14, 1024, %s133_s5, %s121_s16, %s2020_s27, %s2020_s27, %s2021_s3  }
  0x25   : > { %144 = sbr.rel (%p2108_p13) target bundleno = 776 (0x308), region = 28  ;;  %s2145_s4 = sand.u32 (!%p2108_p13), 1, %s2009_s10  }
  0x26   : > { %s1705_s6 = sshll.u32 (!%p2108_p13), %s2145_s4, 6  ;;  %s147_s7 = scalar_lea.sflag (!%p2108_p13), [#allocation4], %s2145_s4 }
  0x27   : > { %s2151_s8 = scalar_lea.vmem (!%p2108_p13), [#allocation3], %s1705_s6 }
  0x2a   : > { %1992 = dma.done.wait (%p2093_p6), %s147_s7, 1024  }
  0x2b   : > { %1994 = vsyncadd (%p2093_p6), %s147_s7, 4294966272 }
  0x2c   : > { %1996 = dma.done.wait (%p40_p4), [#allocation6], 16  }
  0x2d   : > { %1998 = vsyncadd (%p40_p4), [#allocation6], 4294967280 }
  0x2e   : > { %161 = sfence }
  0x2f   : > { %v178_v0 = vld [vmem:[%s2151_s8] sm:$0xff]  ;;  %v180_v1 = vld [vmem:[%s2151_s8 + $0x10] sm:$0xff]  ;;  %vm186_vm0 = vcmask 130048   ;;  %v179_v7 = vld [vmem:[%s2151_s8 + $0x8] sm:$0xff]  ;;  %v2022_v9 = vmov 4.0   ;;  %s2023_s20 = smov 3  }
  0x30   : > { %v182_v2 = vld [vmem:[%s2151_s8 + $0x20] sm:$0xff]  ;;  %v184_v3 = vld [vmem:[%s2151_s8 + $0x30] sm:$0xff]  ;;  %v210_v4 = vsel %vm186_vm0, %v178_v0, -inf  ;;  %v211_v5 = vsel %vm186_vm0, %v180_v1, -inf  ;;  %v181_v8 = vld [vmem:[%s2151_s8 + $0x18] sm:$0xff]  ;;  %1884 = vrcp.f32 %v2022_v9  ;;  %v217_v15 = vsel %vm186_vm0, %v179_v7, -inf }
  0x31   : > { %v212_v6 = vsel %vm186_vm0, %v182_v2, -inf  ;;  %v214_v11 = vsel %vm186_vm0, %v184_v3, -inf  ;;  %v183_v12 = vld [vmem:[%s2151_s8 + $0x28] sm:$0xff]  ;;  %v185_v13 = vld [vmem:[%s2151_s8 + $0x38] sm:$0xff]  ;;  %v187_v16 = vsel %vm186_vm0, %v178_v0, 0.0  ;;  %v218_v17 = vsel %vm186_vm0, %v181_v8, -inf }
  0x32   : > { %v213_v10 = vmax.f32 %v210_v4, %v212_v6  ;;  %v215_v14 = vmax.f32 %v211_v5, %v214_v11  ;;  %v219_v18 = vsel %vm186_vm0, %v183_v12, -inf  ;;  %v221_v19 = vsel %vm186_vm0, %v185_v13, -inf  ;;  %s1710_s23 = sld [smem:[#allocation7 + $0x32]]  ;;  %s2025_s17 = smov 127  }
  0x33   : > { %v188_v20 = vsel %vm186_vm0, %v180_v1, 0.0  ;;  %v190_v23 = vsel %vm186_vm0, %v182_v2, 0.0  ;;  %v220_v25 = vmax.f32 %v217_v15, %v219_v18  ;;  %v222_v26 = vmax.f32 %v218_v17, %v221_v19  ;;  %s2190_s28 = sld [smem:[#allocation7 + $0x31]]  ;;  %s2026_s24 = smov 126  }
  0x34   : > { %v216_v21 = vmax.f32 %v213_v10, %v215_v14  ;;  %v189_v22 = vadd.f32 %v188_v20, %v187_v16  ;;  %vm224_vm1 = vcmask 179200   ;;  %v194_v27 = vsel %vm186_vm0, %v179_v7, 0.0  ;;  %s2192_s5 = sld [smem:[#allocation7 + $0x33]]  ;;  %s2027_s25 = smov 125  }
  0x35   : > { %v195_v28 = vsel %vm186_vm0, %v181_v8, 0.0  ;;  %v2024_v30 = vmov 0.0   ;;  %v192_v32 = vsel %vm186_vm0, %v184_v3, 0.0  ;;  %v223_v34 = vmax.f32 %v220_v25, %v222_v26  ;;  %s1714_s14 = sld [smem:[#allocation7 + $0x34]]  ;;  %s2028_s30 = smov 124  }
  0x36   : > { %v1885_v24 = vpop.eup %1884  ;;  %245 = vrot.lane.b32.xlu1 %v216_v21, %s2023_s20  ;;  %229 = vst.msk [vmem:[#allocation2 + $0x18] sm:$0xff] %vm224_vm1, %v2024_v30  ;;  %v191_v31 = vadd.f32 %v190_v23, %v189_v22  ;;  %v196_v35 = vadd.f32 %v195_v28, %v194_v27  ;;  %v197_v36 = vsel %vm186_vm0, %v183_v12, 0.0  ;;  %v199_v41 = vsel %vm186_vm0, %v185_v13, 0.0  ;;  %s2195_s16 = sld [smem:[#allocation7]]  ;;  %s2029_s3 = smov 123  }
  0x37   : > { %v202_v29 = vmul.f32 4.0, %v1885_v24  ;;  %230 = vst.msk [vmem:[#allocation2 + $0x20] sm:$0xff] %vm224_vm1, %v2024_v30  ;;  %vm206_vm2 = vweird.f32 %v1885_v24  ;;  %vm227_vm3 = vcmask 177152   ;;  %vm240_vm4 = vcmask 154648   ;;  %s2199_s19 = sld [smem:[#allocation7 + $0x35]]  ;;  %s2030_s7 = smov 122  }
  0x38   : > { %225 = vst.msk [vmem:[#allocation2] sm:$0xff] %vm224_vm1, %v2024_v30  ;;  %v193_v38 = vadd.f32 %v192_v32, %v191_v31  ;;  %v198_v40 = vadd.f32 %v197_v36, %v196_v35  ;;  %v285_v47 = vstv %s1710_s23  ;;  %s1718_s26 = sld [smem:[#allocation7 + $0x36]] }
  0x39   : > { %v203_v33 = vsub.f32 1.0, %v202_v29  ;;  %226 = vst.msk [vmem:[#allocation2 + $0x8] sm:$0xff] %vm224_vm1, %v2024_v30  ;;  %v265_v57 = vstv %s2190_s28  ;;  %s1720_s29 = sld [smem:[#allocation7 + $0x37]] }
  0x3a   : > { %v200_v44 = vadd.f32 %v199_v41, %v198_v40  ;;  %231 = vst.msk [vmem:[#allocation2 + $0x28] sm:$0x3f] %vm227_vm3, %v2024_v30  ;;  %v313_v53 = vstv %s2192_s5  ;;  %s1724_s27 = sld [smem:[#allocation7 + $0x39]] }
  0x3b   : > { %v204_v37 = vmul.f32 %v1885_v24, %v203_v33  ;;  %228 = vst.msk [vmem:[#allocation2 + $0x10] sm:$0x3f] %vm227_vm3, %v2024_v30  ;;  %v341_v56 = vstv %s1714_s14  ;;  %s1728_s23 = sld [smem:[#allocation7 + $0x3b]] }
  0x3c   : > { %v260_v58 = vstv %s2195_s16  ;;  %s1730_s28 = sld [smem:[#allocation7 + $0x3c]] }
  0x3d   : > { %v205_v39 = vadd.f32 %v1885_v24, %v204_v37  ;;  %v369_v1 = vstv %s2199_s19  ;;  %s1732_s5 = sld [smem:[#allocation7 + $0x3d]] }
  0x3e   : > { %247 = vrot.lane.b32.xlu1 %v223_v34, %s2023_s20  ;;  %v397_v9 = vstv %s1718_s26  ;;  %s1734_s14 = sld [smem:[#allocation7 + $0x3e]] }
  0x3f   : > { %v207_v42 = vsel %vm206_vm2, %v1885_v24, %v205_v39  ;;  %v425_v12 = vstv %s1720_s29  ;;  %s1738_s16 = sld [smem:[#allocation7 + $0x40]] }
  0x40   : > { %v208_v43 = vmul.f32 %v207_v42, %v193_v38  ;;  %v209_v45 = vmul.f32 %v207_v42, %v200_v44  ;;  %v469_v15 = vstv %s1724_s27  ;;  %s1709_s19 = sld [smem:[#allocation7 + $0x1]] }
  0x41   : > { %v525_v23 = vstv %s1728_s23  ;;  %s1711_s26 = sld [smem:[#allocation7 + $0x2]] }
  0x42   : > { %234 = vrot.lane.b32.xlu0 %v208_v43, %s2023_s20  ;;  %v553_v25 = vstv %s1730_s28  ;;  %s1713_s29 = sld [smem:[#allocation7 + $0x3]] }
  0x43   : > { %v581_v29 = vstv %s1732_s5  ;;  %s1715_s27 = sld [smem:[#allocation7 + $0x4]] }
  0x44   : > { %v609_v32 = vstv %s1734_s14  ;;  %s1719_s23 = sld [smem:[#allocation7 + $0x6]] }
  0x45   : > { %v653_v35 = vstv %s1738_s16  ;;  %s1723_s28 = sld [smem:[#allocation7 + $0x8]] }
  0x46   : > { %v272_v40 = vstv %s1709_s19  ;;  %s2282_s5 = sld [smem:[#allocation7 + $0x9]] }
  0x47   : > { %v300_v41 = vstv %s1711_s26  ;;  %s1727_s14 = sld [smem:[#allocation7 + $0xa]] }
  0x48   : > { %s1729_s16 = sld [smem:[#allocation7 + $0xb]] }
  0x49   : > { %s2305_s19 = sld [smem:[#allocation7 + $0xc]] }
  0x4a   : > { %236 = vrot.lane.b32.xlu0 %v209_v45, %s2023_s20  ;;  %s1726_s20 = sld [smem:[#allocation7 + $0x3a]]  ;;  %v328_v45 = vstv %s1713_s29 }
  0x4b   : > { %s1733_s26 = sld [smem:[#allocation7 + $0xd]] }
  0x4c   : > { %s1737_s29 = sld [smem:[#allocation7 + $0xf]] }
  0x50   : > { %v497_v20 = vstv %s1726_s20  ;;  %s2267_s20 = sld [smem:[#allocation7 + $0x5]] }
  0xa8   : > { %v246_v46 = vpop.permute.xlu1 %245 }
  0xa9   : > { %252 = vst.msk [vmem:[#allocation2 + $0x1b] sm:$0xff] %vm240_vm4, %v246_v46 }
  0xb0   : > { %v256_v48 = vld [vmem:[#allocation2 + $0x18] sm:$0xff]  ;;  %v248_v49 = vpop.permute.xlu1 %247 }
  0xb1   : > { %253 = vst.msk [vmem:[#allocation2 + $0x23] sm:$0xff] %vm240_vm4, %v248_v49  ;;  %v286_v50 = vmul.f32 %v285_v47, %v256_v48  ;;  %v266_v62 = vmul.f32 %v265_v57, %v256_v48  ;;  %v314_v2 = vmul.f32 %v313_v53, %v256_v48  ;;  %v342_v3 = vmul.f32 %v341_v56, %v256_v48  ;;  %v2225_v14 = vld [vmem:[#allocation2 + $0x19] sm:$0xff] }
  0xb2   : > { %v370_v4 = vmul.f32 %v369_v1, %v256_v48  ;;  %v426_v16 = vmul.f32 %v425_v12, %v256_v48  ;;  %v398_v17 = vmul.f32 %v397_v9, %v256_v48  ;;  %v470_v18 = vmul.f32 %v469_v15, %v2225_v14  ;;  %v2251_v34 = vld [vmem:[#allocation2 + $0x1a] sm:$0xff] }
  0xb3   : > { %290 = vrot.lane.b32.xlu0 %v286_v50, %s2025_s17  ;;  %v526_v26 = vmul.f32 %v525_v23, %v2225_v14  ;;  %v498_v27 = vmul.f32 %v497_v20, %v2225_v14  ;;  %v554_v28 = vmul.f32 %v553_v25, %v2225_v14  ;;  %v610_v36 = vmul.f32 %v609_v32, %v2225_v14 }
  0xb4   : > { %v235_v51 = vpop.permute.xlu0 %234  ;;  %v582_v37 = vmul.f32 %v581_v29, %v2225_v14  ;;  %v654_v38 = vmul.f32 %v653_v35, %v2251_v34  ;;  %v356_v49 = vstv %s1715_s27  ;;  %v384_v50 = vstv %s2267_s20  ;;  %s2330_s27 = sld [smem:[#allocation7 + $0x10]] }
  0xb5   : > { %241 = vst.msk [vmem:[#allocation2 + $0x3] sm:$0xff] %vm240_vm4, %v235_v51  ;;  %s2346_s20 = sld [smem:[#allocation7 + $0x41]] }
  0xb8   : > { %v257_v52 = vld [vmem:[#allocation2 + $0x20] sm:$0xff] }
  0xb9   : > { %v315_v54 = vmul.f32 %v313_v53, %v257_v52  ;;  %v287_v55 = vmul.f32 %v285_v47, %v257_v52  ;;  %v343_v59 = vmul.f32 %v341_v56, %v257_v52  ;;  %v267_v6 = vmul.f32 %v265_v57, %v257_v52  ;;  %v2231_v19 = vld [vmem:[#allocation2 + $0x21] sm:$0xff] }
  0xba   : > { %v399_v10 = vmul.f32 %v397_v9, %v257_v52  ;;  %v371_v11 = vmul.f32 %v369_v1, %v257_v52  ;;  %v427_v13 = vmul.f32 %v425_v12, %v257_v52  ;;  %v499_v21 = vmul.f32 %v497_v20, %v2231_v19  ;;  %v2259_v39 = vld [vmem:[#allocation2 + $0x22] sm:$0xff] }
  0xbb   : > { %320 = vrot.lane.b32.xlu2 %v315_v54, %s2026_s24  ;;  %292 = vrot.lane.b32.xlu1 %v287_v55, %s2025_s17  ;;  %v471_v22 = vmul.f32 %v469_v15, %v2231_v19  ;;  %v527_v24 = vmul.f32 %v525_v23, %v2231_v19  ;;  %v583_v30 = vmul.f32 %v581_v29, %v2231_v19  ;;  %v412_v54 = vstv %s1719_s23  ;;  %s1741_s23 = sld [smem:[#allocation7 + $0x11]] }
  0xbc   : > { %v2206_v60 = vld [vmem:[#allocation2] sm:$0xff]  ;;  %348 = vrot.lane.b32.xlu0 %v343_v59, %s2027_s25  ;;  %v237_v61 = vpop.permute.xlu0 %236  ;;  %v555_v31 = vmul.f32 %v553_v25, %v2231_v19  ;;  %v611_v33 = vmul.f32 %v609_v32, %v2231_v19  ;;  %v655_v42 = vmul.f32 %v653_v35, %v2259_v39  ;;  %v568_v12 = vstv %s2305_s19  ;;  %s2407_s19 = sld [smem:[#allocation7 + $0x44]] }
  0xbd   : > { %v261_v63 = vmul.f32 %v260_v58, %v2206_v60  ;;  %242 = vst.msk [vmem:[#allocation2 + $0xb] sm:$0xff] %vm240_vm4, %v237_v61  ;;  %v273_v43 = vmul.f32 %v272_v40, %v2206_v60  ;;  %v329_v48 = vmul.f32 %v328_v45, %v2206_v60  ;;  %v357_v51 = vmul.f32 %v356_v49, %v2206_v60  ;;  %v2292_v59 = vld [vmem:[#allocation2 + $0x1] sm:$0xff] }
  0xbe   : > { %v301_v52 = vmul.f32 %v300_v41, %v2206_v60  ;;  %v413_v57 = vmul.f32 %v412_v54, %v2206_v60  ;;  %v456_v61 = vstv %s1723_s28  ;;  %v640_v29 = vstv %s1737_s29  ;;  %s2366_s28 = sld [smem:[#allocation7 + $0x42]] }
  0xbf   : > { %v2211_v0 = vadd.f32 %v266_v62, %v261_v63  ;;  %v484_v63 = vstv %s2282_s5  ;;  %v457_v1 = vmul.f32 %v456_v61, %v2292_v59  ;;  %s2378_s5 = sld [smem:[#allocation7 + $0x12]] }
  0xc0   : > { %v485_v15 = vmul.f32 %v484_v63, %v2292_v59  ;;  %s2424_s29 = sld [smem:[#allocation7 + $0x45]] }
  0xc3   : > { %346 = vrot.lane.b32.xlu2 %v342_v3, %s2027_s25  ;;  %318 = vrot.lane.b32.xlu1 %v314_v2, %s2026_s24  ;;  %v385_v2 = vmul.f32 %v384_v50, %v2206_v60 }
  0xc4   : > { %v2216_v5 = vld [vmem:[#allocation2 + $0x8] sm:$0xff]  ;;  %374 = vrot.lane.b32.xlu0 %v370_v4, %s2028_s30 }
  0xc5   : > { %v262_v7 = vmul.f32 %v260_v58, %v2216_v5  ;;  %v302_v44 = vmul.f32 %v300_v41, %v2216_v5  ;;  %v330_v46 = vmul.f32 %v328_v45, %v2216_v5  ;;  %v274_v47 = vmul.f32 %v272_v40, %v2216_v5  ;;  %v2294_v62 = vld [vmem:[#allocation2 + $0x9] sm:$0xff] }
  0xc6   : > { %v386_v53 = vmul.f32 %v384_v50, %v2216_v5  ;;  %v414_v55 = vmul.f32 %v412_v54, %v2216_v5  ;;  %v358_v56 = vmul.f32 %v356_v49, %v2216_v5  ;;  %v486_v3 = vmul.f32 %v484_v63, %v2294_v62 }
  0xc7   : > { %v2220_v8 = vadd.f32 %v267_v6, %v262_v7  ;;  %v512_v5 = vstv %s1727_s14  ;;  %v458_v7 = vmul.f32 %v456_v61, %v2294_v62  ;;  %v681_v40 = vstv %s2346_s20  ;;  %s1744_s14 = sld [smem:[#allocation7 + $0x43]] }
  0xc8   : > { %v514_v6 = vmul.f32 %v512_v5, %v2294_v62  ;;  %v513_v60 = vmul.f32 %v512_v5, %v2292_v59  ;;  %v696_v41 = vstv %s1741_s23  ;;  %v709_v49 = vstv %s2366_s28  ;;  %s2437_s20 = sld [smem:[#allocation7 + $0x47]] }
  0xc9   : > { %v683_v61 = vmul.f32 %v681_v40, %v2259_v39  ;;  %s2457_s23 = sld [smem:[#allocation7 + $0x17]] }
  0xca   : > { %s2467_s28 = sld [smem:[#allocation7 + $0x48]] }
  0xcb   : > { %404 = vrot.lane.b32.xlu2 %v399_v10, %s2029_s3  ;;  %376 = vrot.lane.b32.xlu1 %v371_v11, %s2028_s30  ;;  %v540_v11 = vstv %s1729_s16  ;;  %s2394_s16 = sld [smem:[#allocation7 + $0x13]] }
  0xcc   : > { %432 = vrot.lane.b32.xlu0 %v427_v13, %s2030_s7  ;;  %v541_v13 = vmul.f32 %v540_v11, %v2292_v59  ;;  %v542_v23 = vmul.f32 %v540_v11, %v2294_v62 }
  0xd3   : > { %430 = vrot.lane.b32.xlu2 %v426_v16, %s2030_s7  ;;  %402 = vrot.lane.b32.xlu1 %v398_v17, %s2029_s3  ;;  %v570_v16 = vmul.f32 %v568_v12, %v2294_v62 }
  0xd4   : > { %474 = vrot.lane.b32.xlu0 %v470_v18, %s2025_s17 }
  0xdb   : > { %504 = vrot.lane.b32.xlu2 %v499_v21, %s2026_s24  ;;  %476 = vrot.lane.b32.xlu1 %v471_v22, %s2025_s17  ;;  %v596_v21 = vstv %s1733_s26  ;;  %s1747_s26 = sld [smem:[#allocation7 + $0x14]] }
  0xdc   : > { %532 = vrot.lane.b32.xlu0 %v527_v24, %s2027_s25  ;;  %v598_v22 = vmul.f32 %v596_v21, %v2294_v62  ;;  %v597_v24 = vmul.f32 %v596_v21, %v2292_v59 }
  0xe1   : > { %v780_v21 = vstv %s1747_s26  ;;  %s2501_s26 = sld [smem:[#allocation7 + $0x19]] }
  0xe3   : > { %530 = vrot.lane.b32.xlu2 %v526_v26, %s2027_s25  ;;  %502 = vrot.lane.b32.xlu1 %v498_v27, %s2026_s24 }
  0xe4   : > { %558 = vrot.lane.b32.xlu0 %v554_v28, %s2028_s30  ;;  %v2344_v28 = vld [vmem:[#allocation2 + $0x2] sm:$0xff] }
  0xe5   : > { %v641_v32 = vmul.f32 %v640_v29, %v2344_v28 }
  0xeb   : > { %588 = vrot.lane.b32.xlu2 %v583_v30, %s2029_s3  ;;  %560 = vrot.lane.b32.xlu1 %v555_v31, %s2028_s30  ;;  %v2348_v30 = vld [vmem:[#allocation2 + $0xa] sm:$0xff]  ;;  %v668_v31 = vstv %s2330_s27  ;;  %s2435_s27 = sld [smem:[#allocation7 + $0x16]] }
  0xec   : > { %616 = vrot.lane.b32.xlu0 %v611_v33, %s2030_s7  ;;  %v569_v33 = vmul.f32 %v568_v12, %v2292_v59  ;;  %v670_v35 = vmul.f32 %v668_v31, %v2348_v30  ;;  %v669_v50 = vmul.f32 %v668_v31, %v2344_v28 }
  0xf3   : > { %614 = vrot.lane.b32.xlu2 %v610_v36, %s2030_s7  ;;  %586 = vrot.lane.b32.xlu1 %v582_v37, %s2029_s3 }
  0xf4   : > { %658 = vrot.lane.b32.xlu0 %v654_v38, %s2025_s17 }
  0xfb   : > { %660 = vrot.lane.b32.xlu1 %v655_v42, %s2025_s17  ;;  %277 = vrot.lane.b32.xlu2 %v273_v43, %s2025_s17  ;;  %v682_v42 = vmul.f32 %v681_v40, %v2251_v34  ;;  %v642_v43 = vmul.f32 %v640_v29, %v2348_v30  ;;  %v793_v40 = vstv %s2424_s29  ;;  %s2503_s29 = sld [smem:[#allocation7 + $0x4a]] }
  0xfc   : > { %307 = vrot.lane.b32.xlu0 %v302_v44, %s2026_s24  ;;  %v697_v44 = vmul.f32 %v696_v41, %v2344_v28 }
 0x103   : > { %335 = vrot.lane.b32.xlu1 %v330_v46, %s2027_s25  ;;  %279 = vrot.lane.b32.xlu2 %v274_v47, %s2025_s17 }
 0x104   : > { %333 = vrot.lane.b32.xlu0 %v329_v48, %s2027_s25  ;;  %v698_v48 = vmul.f32 %v696_v41, %v2348_v30 }
 0x10b   : > { %361 = vrot.lane.b32.xlu1 %v357_v51, %s2028_s30  ;;  %305 = vrot.lane.b32.xlu2 %v301_v52, %s2026_s24  ;;  %v711_v51 = vmul.f32 %v709_v49, %v2259_v39 }
 0x10c   : > { %391 = vrot.lane.b32.xlu0 %v386_v53, %s2029_s3 }
 0x113   : > { %419 = vrot.lane.b32.xlu1 %v414_v55, %s2030_s7  ;;  %363 = vrot.lane.b32.xlu2 %v358_v56, %s2028_s30  ;;  %v724_v55 = vstv %s2378_s5  ;;  %v737_v56 = vstv %s1744_s14  ;;  %s2471_s5 = sld [smem:[#allocation7 + $0x18]] }
 0x114   : > { %417 = vrot.lane.b32.xlu0 %v413_v57, %s2030_s7  ;;  %v725_v57 = vmul.f32 %v724_v55, %v2344_v28  ;;  %v738_v63 = vmul.f32 %v737_v56, %v2251_v34  ;;  %s2483_s14 = sld [smem:[#allocation7 + $0x7]] }
 0x115   : > { %v2290_v58 = vpop.permute.xlu2 %320 }
 0x11b   : > { %461 = vrot.lane.b32.xlu1 %v457_v1, %s2025_s17  ;;  %389 = vrot.lane.b32.xlu2 %v385_v2, %s2029_s3 }
 0x11c   : > { %491 = vrot.lane.b32.xlu0 %v486_v3, %s2026_s24 }
 0x11d   : > { %v2303_v4 = vpop.permute.xlu2 %346 }
 0x123   : > { %519 = vrot.lane.b32.xlu1 %v514_v6, %s2027_s25  ;;  %463 = vrot.lane.b32.xlu2 %v458_v7, %s2025_s17  ;;  %v752_v6 = vstv %s2394_s16  ;;  %v739_v7 = vmul.f32 %v737_v56, %v2259_v39  ;;  %v837_v56 = vstv %s2437_s20  ;;  %s2486_s16 = sld [smem:[#allocation7 + $0x38]] }
 0x124   : > { %517 = vrot.lane.b32.xlu0 %v513_v60, %s2027_s25  ;;  %v710_v60 = vmul.f32 %v709_v49, %v2251_v34  ;;  %v754_v11 = vmul.f32 %v752_v6, %v2348_v30  ;;  %v753_v41 = vmul.f32 %v752_v6, %v2344_v28  ;;  %v2449_v49 = vld [vmem:[#allocation2 + $0x3] sm:$0xff]  ;;  %s2533_s20 = sld [smem:[#allocation7 + $0x4b]] }
 0x125   : > { %v2313_v9 = vpop.permute.xlu2 %404  ;;  %v2315_v10 = vpop.permute.xlu0 %290 }
 0x12b   : > { %545 = vrot.lane.b32.xlu1 %v541_v13, %s2028_s30  ;;  %489 = vrot.lane.b32.xlu2 %v485_v15, %s2026_s24 }
 0x12c   : > { %575 = vrot.lane.b32.xlu0 %v570_v16, %s2029_s3  ;;  %v765_v16 = vstv %s2407_s19  ;;  %s2490_s19 = sld [smem:[#allocation7 + $0x49]] }
 0x12d   : > { %v2324_v17 = vpop.permute.xlu2 %430  ;;  %v2326_v18 = vpop.permute.xlu1 %292 }
 0x12e   : > { %v2328_v20 = vpop.permute.xlu0 %348 }
 0x133   : > { %603 = vrot.lane.b32.xlu1 %v598_v22, %s2030_s7  ;;  %547 = vrot.lane.b32.xlu2 %v542_v23, %s2028_s30  ;;  %v766_v22 = vmul.f32 %v765_v16, %v2251_v34  ;;  %v726_v23 = vmul.f32 %v724_v55, %v2348_v30  ;;  %v2452_v55 = vld [vmem:[#allocation2 + $0x1b] sm:$0xff] }
 0x134   : > { %601 = vrot.lane.b32.xlu0 %v597_v24, %s2030_s7  ;;  %v781_v24 = vmul.f32 %v780_v21, %v2344_v28 }
 0x135   : > { %v2338_v25 = vpop.permute.xlu2 %504  ;;  %v2340_v26 = vpop.permute.xlu1 %318 }
 0x136   : > { %v2342_v27 = vpop.permute.xlu0 %374 }
 0x13b   : > { %645 = vrot.lane.b32.xlu1 %v641_v32, %s2025_s17  ;;  %573 = vrot.lane.b32.xlu2 %v569_v33, %s2029_s3 }
 0x13c   : > { %675 = vrot.lane.b32.xlu0 %v670_v35, %s2026_s24  ;;  %v782_v35 = vmul.f32 %v780_v21, %v2348_v30  ;;  %v852_v21 = vstv %s2457_s23  ;;  %s2535_s23 = sld [smem:[#allocation7 + $0x1b]] }
 0x13d   : > { %v2357_v36 = vpop.permute.xlu2 %530  ;;  %v2359_v37 = vpop.permute.xlu1 %376 }
 0x13e   : > { %v2361_v38 = vpop.permute.xlu0 %432 }
 0x143   : > { %686 = vrot.lane.b32.xlu1 %v682_v42, %s2026_s24  ;;  %647 = vrot.lane.b32.xlu2 %v642_v43, %s2025_s17 }
 0x144   : > { %701 = vrot.lane.b32.xlu0 %v697_v44, %s2027_s25 }
 0x145   : > { %v2372_v45 = vpop.permute.xlu2 %588  ;;  %v2374_v46 = vpop.permute.xlu1 %402 }
 0x146   : > { %v2376_v47 = vpop.permute.xlu0 %474 }
 0x14b   : > { %703 = vrot.lane.b32.xlu1 %v698_v48, %s2027_s25  ;;  %673 = vrot.lane.b32.xlu2 %v669_v50, %s2026_s24  ;;  %v824_v50 = vstv %s2435_s27  ;;  %s2525_s27 = sld [smem:[#allocation7 + $0x1a]] }
 0x14c   : > { %716 = vrot.lane.b32.xlu0 %v711_v51, %s2027_s25 }
 0x14d   : > { %v2387_v52 = vpop.permute.xlu2 %614  ;;  %v2389_v53 = vpop.permute.xlu1 %476 }
 0x14e   : > { %v2391_v54 = vpop.permute.xlu0 %532 }
 0x153   : > { %729 = vrot.lane.b32.xlu1 %v725_v57, %s2028_s30  ;;  %688 = vrot.lane.b32.xlu2 %v683_v61, %s2026_s24  ;;  %v825_v57 = vmul.f32 %v824_v50, %v2449_v49  ;;  %v767_v61 = vmul.f32 %v765_v16, %v2259_v39 }
 0x154   : > { %742 = vrot.lane.b32.xlu0 %v738_v63, %s2028_s30  ;;  %v838_v63 = vmul.f32 %v837_v56, %v2452_v55 }
 0x155   : > { %v2402_v1 = vpop.permute.xlu1 %502  ;;  %v278_v2 = vpop.permute.xlu2 %277 }
 0x156   : > { %v283_v3 = vadd.f32 %v278_v2, %v2211_v0  ;;  %v2405_v5 = vpop.permute.xlu0 %558 }
 0x158   : > { %v296_v29 = vadd.f32 %v2315_v10, %v283_v3  ;;  %v795_v10 = vmul.f32 %v793_v40, %v2259_v39 }
 0x15b   : > { %744 = vrot.lane.b32.xlu1 %v739_v7, %s2028_s30  ;;  %714 = vrot.lane.b32.xlu2 %v710_v60, %s2027_s25 }
 0x15c   : > { %759 = vrot.lane.b32.xlu0 %v754_v11, %s2029_s3  ;;  %v2465_v11 = vld [vmem:[#allocation2 + $0x23] sm:$0xff] }
 0x15d   : > { %v2416_v0 = vpop.permute.xlu1 %560  ;;  %v280_v12 = vpop.permute.xlu2 %279 }
 0x15e   : > { %v284_v13 = vadd.f32 %v280_v12, %v2220_v8  ;;  %v2419_v15 = vpop.permute.xlu0 %616 }
 0x160   : > { %v297_v42 = vadd.f32 %v2326_v18, %v284_v13  ;;  %v2469_v13 = vld [vmem:[#allocation2 + $0xb] sm:$0xff] }
 0x163   : > { %770 = vrot.lane.b32.xlu1 %v766_v22, %s2029_s3  ;;  %731 = vrot.lane.b32.xlu2 %v726_v23, %s2028_s30  ;;  %v854_v23 = vmul.f32 %v852_v21, %v2469_v13 }
 0x164   : > { %785 = vrot.lane.b32.xlu0 %v781_v24, %s2030_s7 }
 0x165   : > { %v2431_v8 = vpop.permute.xlu1 %586  ;;  %v306_v31 = vpop.permute.xlu2 %305 }
 0x166   : > { %v311_v32 = vadd.f32 %v306_v31, %v296_v29  ;;  %v2433_v33 = vpop.permute.xlu0 %658 }
 0x168   : > { %v324_v2 = vadd.f32 %v2340_v26, %v311_v32  ;;  %v794_v26 = vmul.f32 %v793_v40, %v2251_v34  ;;  %v865_v40 = vstv %s2467_s28  ;;  %s2547_s28 = sld [smem:[#allocation7 + $0xe]] }
 0x16b   : > { %787 = vrot.lane.b32.xlu1 %v782_v35, %s2030_s7  ;;  %757 = vrot.lane.b32.xlu2 %v753_v41, %s2029_s3 }
 0x16c   : > { %800 = vrot.lane.b32.xlu0 %v795_v10, %s2030_s7  ;;  %v880_v10 = vstv %s2471_s5  ;;  %s2551_s5 = sld [smem:[#allocation7 + $0x3f]] }
 0x16d   : > { %v2447_v43 = vpop.permute.xlu1 %660  ;;  %v364_v44 = vpop.permute.xlu2 %363 }
 0x16e   : > { %v308_v48 = vpop.permute.xlu0 %307 }
 0x16f   : > { %v312_v51 = vadd.f32 %v308_v48, %v297_v42  ;;  %v881_v48 = vmul.f32 %v880_v10, %v2449_v49 }
 0x171   : > { %v325_v18 = vadd.f32 %v2290_v58, %v312_v51  ;;  %v839_v58 = vmul.f32 %v837_v56, %v2465_v11 }
 0x173   : > { %829 = vrot.lane.b32.xlu1 %v825_v57, %s2025_s17  ;;  %772 = vrot.lane.b32.xlu2 %v767_v61, %s2029_s3 }
 0x174   : > { %842 = vrot.lane.b32.xlu0 %v838_v63, %s2025_s17 }
 0x175   : > { %v336_v3 = vpop.permute.xlu1 %335  ;;  %v390_v6 = vpop.permute.xlu2 %389 }
 0x176   : > { %v340_v7 = vadd.f32 %v336_v3, %v325_v18  ;;  %v334_v60 = vpop.permute.xlu0 %333 }
 0x177   : > { %v339_v12 = vadd.f32 %v334_v60, %v324_v2  ;;  %v449_v2 = vstv %s2486_s16  ;;  %v882_v60 = vmul.f32 %v880_v10, %v2469_v13  ;;  %s2565_s16 = sld [smem:[#allocation7 + $0x1d]] }
 0x178   : > { %v353_v16 = vadd.f32 %v2328_v20, %v340_v7 }
 0x179   : > { %v352_v29 = vadd.f32 %v2303_v4, %v339_v12  ;;  %v866_v4 = vmul.f32 %v865_v40, %v2452_v55  ;;  %v853_v12 = vmul.f32 %v852_v21, %v2449_v49 }
 0x17a   : > { %v368_v22 = vadd.f32 %v364_v44, %v353_v16  ;;  %v451_v16 = vmul.f32 %v449_v2, %v2231_v19  ;;  %v908_v19 = vstv %s2501_s26  ;;  %s2593_s26 = sld [smem:[#allocation7 + $0x1e]] }
 0x17b   : > { %844 = vrot.lane.b32.xlu1 %v839_v58, %s2025_s17  ;;  %798 = vrot.lane.b32.xlu2 %v794_v26, %s2030_s7 }
 0x17c   : > { %v381_v24 = vadd.f32 %v2359_v37, %v368_v22  ;;  %859 = vrot.lane.b32.xlu0 %v854_v23, %s2026_s24  ;;  %v826_v37 = vmul.f32 %v824_v50, %v2469_v13 }
 0x17d   : > { %v362_v20 = vpop.permute.xlu1 %361  ;;  %v464_v31 = vpop.permute.xlu2 %463 }
 0x17e   : > { %v367_v32 = vadd.f32 %v362_v20, %v352_v29  ;;  %v392_v35 = vpop.permute.xlu0 %391  ;;  %v921_v20 = vstv %s2503_s29  ;;  %s2601_s29 = sld [smem:[#allocation7 + $0x4f]] }
 0x17f   : > { %v396_v41 = vadd.f32 %v392_v35, %v381_v24  ;;  %v909_v35 = vmul.f32 %v908_v19, %v2449_v49 }
 0x180   : > { %v380_v42 = vadd.f32 %v2342_v27, %v367_v32  ;;  %v444_v27 = vstv %s2483_s14  ;;  %s2554_s14 = sld [smem:[#allocation7 + $0x4c]] }
 0x181   : > { %v409_v56 = vadd.f32 %v2313_v9, %v396_v41  ;;  %v446_v3 = vmul.f32 %v444_v27, %v2294_v62  ;;  %v445_v9 = vmul.f32 %v444_v27, %v2292_v59  ;;  %v450_v62 = vmul.f32 %v449_v2, %v2225_v14 }
 0x182   : > { %v395_v44 = vadd.f32 %v390_v6, %v380_v42  ;;  %v867_v41 = vmul.f32 %v865_v40, %v2465_v11  ;;  %v922_v42 = vmul.f32 %v921_v20, %v2452_v55  ;;  %v936_v27 = vstv %s2525_s27  ;;  %s2605_s27 = sld [smem:[#allocation7 + $0x1f]] }
 0x183   : > { %870 = vrot.lane.b32.xlu1 %v866_v4, %s2026_s24  ;;  %831 = vrot.lane.b32.xlu2 %v826_v37, %s2025_s17 }
 0x184   : > { %v408_v51 = vadd.f32 %v2374_v46, %v395_v44  ;;  %885 = vrot.lane.b32.xlu0 %v881_v48, %s2027_s25  ;;  %v893_v46 = vstv %s2490_s19  ;;  %s2567_s19 = sld [smem:[#allocation7 + $0x4e]] }
 0x185   : > { %v420_v57 = vpop.permute.xlu1 %419  ;;  %v490_v61 = vpop.permute.xlu2 %489  ;;  %v895_v26 = vmul.f32 %v893_v46, %v2465_v11 }
 0x186   : > { %v424_v63 = vadd.f32 %v420_v57, %v409_v56  ;;  %v418_v50 = vpop.permute.xlu0 %417  ;;  %v923_v56 = vmul.f32 %v921_v20, %v2465_v11 }
 0x187   : > { %v423_v18 = vadd.f32 %v418_v50, %v408_v51 }
 0x188   : > { %v437_v6 = vadd.f32 %v2361_v38, %v424_v63 }
 0x189   : > { %v436_v7 = vadd.f32 %v2324_v17, %v423_v18 }
 0x18a   : > { %v448_v58 = vadd.f32 %v446_v3, %v437_v6  ;;  %v949_v3 = vstv %s2533_s20  ;;  %s2616_s20 = sld [smem:[#allocation7 + $0x50]] }
 0x18b   : > { %v447_v22 = vadd.f32 %v445_v9, %v436_v7  ;;  %887 = vrot.lane.b32.xlu1 %v882_v60, %s2027_s25  ;;  %857 = vrot.lane.b32.xlu2 %v853_v12, %s2026_s24 }
 0x18c   : > { %v453_v59 = vadd.f32 %v451_v16, %v448_v58  ;;  %900 = vrot.lane.b32.xlu0 %v895_v26, %s2027_s25 }
 0x18d   : > { %v452_v17 = vadd.f32 %v450_v62, %v447_v22  ;;  %v462_v38 = vpop.permute.xlu1 %461  ;;  %v548_v23 = vpop.permute.xlu2 %547 }
 0x18e   : > { %v468_v21 = vadd.f32 %v464_v31, %v453_v59  ;;  %v492_v24 = vpop.permute.xlu0 %491 }
 0x18f   : > { %v467_v29 = vadd.f32 %v462_v38, %v452_v17  ;;  %v633_v38 = vstv %s2551_s5  ;;  %s2637_s5 = sld [smem:[#allocation7 + $0x15]] }
 0x190   : > { %v481_v32 = vadd.f32 %v2389_v53, %v468_v21 }
 0x191   : > { %v480_v14 = vadd.f32 %v2376_v47, %v467_v29  ;;  %v635_v29 = vmul.f32 %v633_v38, %v2259_v39  ;;  %v2583_v39 = vld [vmem:[#allocation2 + $0x4] sm:$0xff] }
 0x192   : > { %v496_v10 = vadd.f32 %v492_v24, %v481_v32 }
 0x193   : > { %v495_v4 = vadd.f32 %v490_v61, %v480_v14  ;;  %913 = vrot.lane.b32.xlu1 %v909_v35, %s2028_s30  ;;  %872 = vrot.lane.b32.xlu2 %v867_v41, %s2026_s24 }
 0x194   : > { %v509_v31 = vadd.f32 %v2338_v25, %v496_v10  ;;  %926 = vrot.lane.b32.xlu0 %v922_v42, %s2028_s30  ;;  %v894_v25 = vmul.f32 %v893_v46, %v2452_v55  ;;  %v964_v46 = vstv %s2535_s23  ;;  %v1008_v42 = vstv %s2565_s16  ;;  %s2624_s23 = sld [smem:[#allocation7 + $0x20]] }
 0x195   : > { %v508_v47 = vadd.f32 %v2402_v1, %v495_v4  ;;  %v520_v53 = vpop.permute.xlu1 %519  ;;  %v574_v37 = vpop.permute.xlu2 %573  ;;  %v938_v1 = vmul.f32 %v936_v27, %v2469_v13  ;;  %v965_v60 = vmul.f32 %v964_v46, %v2449_v49  ;;  %v966_v24 = vmul.f32 %v964_v46, %v2469_v13  ;;  %s2643_s16 = sld [smem:[#allocation7 + $0x21]] }
 0x196   : > { %v524_v40 = vadd.f32 %v520_v53, %v509_v31  ;;  %v518_v44 = vpop.permute.xlu0 %517  ;;  %v2586_v31 = vld [vmem:[#allocation2 + $0x1c] sm:$0xff] }
 0x197   : > { %v523_v48 = vadd.f32 %v518_v44, %v508_v47 }
 0x198   : > { %v537_v51 = vadd.f32 %v2391_v54, %v524_v40  ;;  %v951_v40 = vmul.f32 %v949_v3, %v2465_v11 }
 0x199   : > { %v536_v63 = vadd.f32 %v2357_v36, %v523_v48  ;;  %v950_v36 = vmul.f32 %v949_v3, %v2452_v55 }
 0x19a   : > { %v552_v57 = vadd.f32 %v548_v23, %v537_v51 }
 0x19b   : > { %928 = vrot.lane.b32.xlu1 %v923_v56, %s2028_s30  ;;  %898 = vrot.lane.b32.xlu2 %v894_v25, %s2027_s25 }
 0x19c   : > { %v565_v61 = vadd.f32 %v2416_v0, %v552_v57  ;;  %943 = vrot.lane.b32.xlu0 %v938_v1, %s2029_s3  ;;  %v910_v0 = vmul.f32 %v908_v19, %v2469_v13  ;;  %v937_v19 = vmul.f32 %v936_v27, %v2449_v49  ;;  %v2599_v57 = vld [vmem:[#allocation2 + $0x24] sm:$0xff]  ;;  %v2603_v1 = vld [vmem:[#allocation2 + $0xc] sm:$0xff] }
 0x19d   : > { %v546_v54 = vpop.permute.xlu1 %545  ;;  %v648_v50 = vpop.permute.xlu2 %647 }
 0x19e   : > { %v551_v18 = vadd.f32 %v546_v54, %v536_v63  ;;  %v576_v2 = vpop.permute.xlu0 %575  ;;  %v1036_v54 = vstv %s2593_s26  ;;  %s2652_s26 = sld [smem:[#allocation7 + $0x22]] }
 0x19f   : > { %v580_v6 = vadd.f32 %v576_v2, %v565_v61  ;;  %v1038_v2 = vmul.f32 %v1036_v54, %v2603_v1 }
 0x1a0   : > { %v564_v9 = vadd.f32 %v2405_v5, %v551_v18  ;;  %v628_v5 = vstv %s2547_s28  ;;  %s2627_s28 = sld [smem:[#allocation7 + $0x51]] }
 0x1a1   : > { %v593_v16 = vadd.f32 %v2372_v45, %v580_v6  ;;  %v630_v17 = vmul.f32 %v628_v5, %v2348_v30  ;;  %v629_v45 = vmul.f32 %v628_v5, %v2344_v28  ;;  %v634_v30 = vmul.f32 %v633_v38, %v2251_v34 }
 0x1a2   : > { %v579_v7 = vadd.f32 %v574_v37, %v564_v9  ;;  %v1021_v34 = vstv %s2567_s19  ;;  %v1009_v37 = vmul.f32 %v1008_v42, %v2583_v39  ;;  %s2649_s19 = sld [smem:[#allocation7 + $0x52]] }
 0x1a3   : > { %954 = vrot.lane.b32.xlu1 %v950_v36, %s2029_s3  ;;  %915 = vrot.lane.b32.xlu2 %v910_v0, %s2028_s30  ;;  %v1022_v48 = vmul.f32 %v1021_v34, %v2586_v31  ;;  %v1023_v63 = vmul.f32 %v1021_v34, %v2599_v57  ;;  %v1049_v36 = vstv %s2601_s29  ;;  %v1064_v0 = vstv %s2605_s27  ;;  %s2666_s29 = sld [smem:[#allocation7 + $0x53]] }
 0x1a4   : > { %v592_v12 = vadd.f32 %v2431_v8, %v579_v7  ;;  %969 = vrot.lane.b32.xlu0 %v965_v60, %s2030_s7  ;;  %v977_v8 = vstv %s2554_s14  ;;  %v1050_v60 = vmul.f32 %v1049_v36, %v2586_v31  ;;  %v1065_v5 = vmul.f32 %v1064_v0, %v2583_v39  ;;  %s2639_s14 = sld [smem:[#allocation7 + $0x46]] }
 0x1a5   : > { %v604_v58 = vpop.permute.xlu1 %603  ;;  %v674_v26 = vpop.permute.xlu2 %673  ;;  %v979_v32 = vmul.f32 %v977_v8, %v2465_v11  ;;  %v1066_v38 = vmul.f32 %v1064_v0, %v2603_v1  ;;  %s2676_s27 = sld [smem:[#allocation7 + $0x24]] }
 0x1a6   : > { %v608_v62 = vadd.f32 %v604_v58, %v593_v16  ;;  %v602_v22 = vpop.permute.xlu0 %601 }
 0x1a7   : > { %v607_v59 = vadd.f32 %v602_v22, %v592_v12  ;;  %v1010_v12 = vmul.f32 %v1008_v42, %v2603_v1 }
 0x1a8   : > { %v621_v23 = vadd.f32 %v2419_v15, %v608_v62 }
 0x1a9   : > { %v620_v21 = vadd.f32 %v2387_v52, %v607_v59  ;;  %v1077_v59 = vstv %s2616_s20  ;;  %s2679_s20 = sld [smem:[#allocation7 + $0x55]] }
 0x1aa   : > { %v632_v20 = vadd.f32 %v630_v17, %v621_v23  ;;  %v1037_v23 = vmul.f32 %v1036_v54, %v2583_v39  ;;  %v1133_v54 = vstv %s2649_s19  ;;  %s2729_s19 = sld [smem:[#allocation7 + $0x58]] }
 0x1ab   : > { %v631_v14 = vadd.f32 %v629_v45, %v620_v21  ;;  %971 = vrot.lane.b32.xlu1 %v966_v24, %s2030_s7  ;;  %941 = vrot.lane.b32.xlu2 %v937_v19, %s2029_s3  ;;  %v1079_v45 = vmul.f32 %v1077_v59, %v2599_v57 }
 0x1ac   : > { %v637_v28 = vadd.f32 %v635_v29, %v632_v20  ;;  %984 = vrot.lane.b32.xlu0 %v979_v32, %s2030_s7  ;;  %v1092_v20 = vstv %s2624_s23  ;;  %v1105_v32 = vstv %s2627_s28  ;;  %s2695_s23 = sld [smem:[#allocation7 + $0x25]] }
 0x1ad   : > { %v636_v52 = vadd.f32 %v634_v30, %v631_v14  ;;  %v646_v15 = vpop.permute.xlu1 %645  ;;  %v689_v35 = vpop.permute.xlu2 %688  ;;  %v1093_v14 = vmul.f32 %v1092_v20, %v2583_v39  ;;  %s2703_s28 = sld [smem:[#allocation7 + $0x56]] }
 0x1ae   : > { %v652_v41 = vadd.f32 %v648_v50, %v637_v28  ;;  %v676_v10 = vpop.permute.xlu0 %675  ;;  %v978_v50 = vmul.f32 %v977_v8, %v2452_v55  ;;  %v1051_v28 = vmul.f32 %v1049_v36, %v2599_v57 }
 0x1af   : > { %v651_v4 = vadd.f32 %v646_v15, %v636_v52  ;;  %v1106_v15 = vmul.f32 %v1105_v32, %v2586_v31 }
 0x1b0   : > { %v665_v47 = vadd.f32 %v2447_v43, %v652_v41 }
 0x1b1   : > { %v664_v53 = vadd.f32 %v2433_v33, %v651_v4  ;;  %v812_v4 = vstv %s2637_s5  ;;  %s2707_s5 = sld [smem:[#allocation7 + $0x26]] }
 0x1b2   : > { %v680_v44 = vadd.f32 %v676_v10, %v665_v47  ;;  %v817_v47 = vstv %s2639_s14  ;;  %s2718_s14 = sld [smem:[#allocation7 + $0x57]] }
 0x1b3   : > { %v679_v51 = vadd.f32 %v674_v26, %v664_v53  ;;  %1013 = vrot.lane.b32.xlu1 %v1009_v37, %s2025_s17  ;;  %956 = vrot.lane.b32.xlu2 %v951_v40, %s2029_s3  ;;  %v1107_v53 = vmul.f32 %v1105_v32, %v2599_v57  ;;  %v1120_v37 = vstv %s2643_s16  ;;  %v1078_v40 = vmul.f32 %v1077_v59, %v2586_v31  ;;  %s2726_s16 = sld [smem:[#allocation7 + $0x27]] }
 0x1b4   : > { %v693_v56 = vadd.f32 %v689_v35, %v680_v44  ;;  %1026 = vrot.lane.b32.xlu0 %v1022_v48, %s2025_s17  ;;  %v813_v44 = vmul.f32 %v812_v4, %v2449_v49  ;;  %v814_v49 = vmul.f32 %v812_v4, %v2469_v13 }
 0x1b5   : > { %v687_v43 = vpop.permute.xlu1 %686  ;;  %v715_v33 = vpop.permute.xlu2 %714 }
 0x1b6   : > { %v692_v27 = vadd.f32 %v687_v43, %v679_v51  ;;  %v702_v25 = vpop.permute.xlu0 %701  ;;  %v1122_v51 = vmul.f32 %v1120_v37, %v2603_v1 }
 0x1b8   : > { %v707_v61 = vadd.f32 %v702_v25, %v692_v27 }
 0x1ba   : > { %v720_v18 = vadd.f32 %v715_v33, %v707_v61 }
 0x1bb   : > { %1028 = vrot.lane.b32.xlu1 %v1023_v63, %s2025_s17  ;;  %982 = vrot.lane.b32.xlu2 %v978_v50, %s2030_s7  ;;  %v1148_v50 = vstv %s2652_s26  ;;  %s2739_s26 = sld [smem:[#allocation7 + $0x1c]] }
 0x1bc   : > { %1043 = vrot.lane.b32.xlu0 %v1038_v2, %s2026_s24  ;;  %v1134_v2 = vmul.f32 %v1133_v54, %v2586_v31 }
 0x1bd   : > { %v704_v3 = vpop.permute.xlu1 %703  ;;  %v732_v6 = vpop.permute.xlu2 %731 }
 0x1be   : > { %v708_v46 = vadd.f32 %v704_v3, %v693_v56  ;;  %v717_v9 = vpop.permute.xlu0 %716  ;;  %v818_v56 = vmul.f32 %v817_v47, %v2452_v55  ;;  %v1094_v55 = vmul.f32 %v1092_v20, %v2603_v1  ;;  %v819_v3 = vmul.f32 %v817_v47, %v2465_v11 }
 0x1c0   : > { %v721_v7 = vadd.f32 %v717_v9, %v708_v46  ;;  %v1149_v46 = vmul.f32 %v1148_v50, %v2583_v39 }
 0x1c2   : > { %v736_v16 = vadd.f32 %v732_v6, %v721_v7 }
 0x1c3   : > { %1054 = vrot.lane.b32.xlu1 %v1050_v60, %s2026_s24  ;;  %1015 = vrot.lane.b32.xlu2 %v1010_v12, %s2025_s17  ;;  %v1161_v12 = vstv %s2666_s29  ;;  %s2741_s29 = sld [smem:[#allocation7 + $0x4d]] }
 0x1c4   : > { %1069 = vrot.lane.b32.xlu0 %v1065_v5, %s2027_s25  ;;  %v1121_v5 = vmul.f32 %v1120_v37, %v2583_v39 }
 0x1c5   : > { %v730_v58 = vpop.permute.xlu1 %729  ;;  %v758_v26 = vpop.permute.xlu2 %757 }
 0x1c6   : > { %v735_v62 = vadd.f32 %v730_v58, %v720_v18  ;;  %v743_v22 = vpop.permute.xlu0 %742 }
 0x1c8   : > { %v748_v17 = vadd.f32 %v743_v22, %v735_v62 }
 0x1ca   : > { %v763_v8 = vadd.f32 %v758_v26, %v748_v17  ;;  %v1163_v26 = vmul.f32 %v1161_v12, %v2599_v57 }
 0x1cb   : > { %1071 = vrot.lane.b32.xlu1 %v1066_v38, %s2027_s25  ;;  %1041 = vrot.lane.b32.xlu2 %v1037_v23, %s2026_s24  ;;  %v2687_v38 = vld [vmem:[#allocation2 + $0x5] sm:$0xff]  ;;  %v1192_v23 = vstv %s2676_s27  ;;  %s2745_s27 = sld [smem:[#allocation7 + $0x28]] }
 0x1cc   : > { %1084 = vrot.lane.b32.xlu0 %v1079_v45, %s2027_s25  ;;  %v1205_v45 = vstv %s2679_s20  ;;  %s2751_s20 = sld [smem:[#allocation7 + $0x59]] }
 0x1cd   : > { %v745_v21 = vpop.permute.xlu1 %744  ;;  %v773_v24 = vpop.permute.xlu2 %772 }
 0x1ce   : > { %v749_v19 = vadd.f32 %v745_v21, %v736_v16  ;;  %v760_v29 = vpop.permute.xlu0 %759  ;;  %v1150_v16 = vmul.f32 %v1148_v50, %v2603_v1  ;;  %v1261_v50 = vstv %s2718_s14  ;;  %s2781_s14 = sld [smem:[#allocation7 + $0x5c]] }
 0x1d0   : > { %v764_v30 = vadd.f32 %v760_v29, %v749_v19  ;;  %v1135_v19 = vmul.f32 %v1133_v54, %v2599_v57 }
 0x1d2   : > { %v777_v52 = vadd.f32 %v773_v24, %v764_v30  ;;  %v1193_v24 = vmul.f32 %v1192_v23, %v2687_v38 }
 0x1d3   : > { %1097 = vrot.lane.b32.xlu1 %v1093_v14, %s2028_s30  ;;  %1056 = vrot.lane.b32.xlu2 %v1051_v28, %s2026_s24 }
 0x1d4   : > { %1110 = vrot.lane.b32.xlu0 %v1106_v15, %s2028_s30  ;;  %v2705_v15 = vld [vmem:[#allocation2 + $0xd] sm:$0xff] }
 0x1d5   : > { %v771_v35 = vpop.permute.xlu1 %770  ;;  %v799_v41 = vpop.permute.xlu2 %798 }
 0x1d6   : > { %v776_v10 = vadd.f32 %v771_v35, %v763_v8  ;;  %v786_v42 = vpop.permute.xlu0 %785  ;;  %v2690_v8 = vld [vmem:[#allocation2 + $0x1d] sm:$0xff] }
 0x1d7   : > { %v1206_v20 = vmul.f32 %v1205_v45, %v2690_v8 }
 0x1d8   : > { %v791_v34 = vadd.f32 %v786_v42, %v776_v10  ;;  %v1220_v10 = vstv %s2695_s23  ;;  %v1162_v42 = vmul.f32 %v1161_v12, %v2586_v31  ;;  %s2754_s23 = sld [smem:[#allocation7 + $0x29]] }
 0x1d9   : > { %v1222_v4 = vmul.f32 %v1220_v10, %v2705_v15 }
 0x1da   : > { %v804_v48 = vadd.f32 %v799_v41, %v791_v34 }
 0x1db   : > { %1112 = vrot.lane.b32.xlu1 %v1107_v53, %s2028_s30  ;;  %1082 = vrot.lane.b32.xlu2 %v1078_v40, %s2027_s25 }
 0x1dc   : > { %v815_v43 = vadd.f32 %v813_v44, %v804_v48  ;;  %1127 = vrot.lane.b32.xlu0 %v1122_v51, %s2029_s3  ;;  %v1233_v44 = vstv %s2703_s28  ;;  %v1248_v48 = vstv %s2707_s5  ;;  %s2768_s28 = sld [smem:[#allocation7 + $0x5a]] }
 0x1dd   : > { %v788_v33 = vpop.permute.xlu1 %787  ;;  %v832_v27 = vpop.permute.xlu2 %831  ;;  %s2778_s5 = sld [smem:[#allocation7 + $0x2b]] }
 0x1de   : > { %v820_v25 = vadd.f32 %v818_v56, %v815_v43  ;;  %v792_v61 = vadd.f32 %v788_v33, %v777_v52  ;;  %v801_v63 = vpop.permute.xlu0 %800  ;;  %v2701_v52 = vld [vmem:[#allocation2 + $0x25] sm:$0xff]  ;;  %v1234_v56 = vmul.f32 %v1233_v44, %v2690_v8  ;;  %v1194_v43 = vmul.f32 %v1192_v23, %v2705_v15 }
 0x1df   : > { %v1207_v41 = vmul.f32 %v1205_v45, %v2701_v52  ;;  %v1249_v33 = vmul.f32 %v1248_v48, %v2687_v38  ;;  %v1235_v12 = vmul.f32 %v1233_v44, %v2701_v52  ;;  %v1304_v23 = vstv %s2745_s27  ;;  %s2828_s27 = sld [smem:[#allocation7 + $0x2e]] }
 0x1e0   : > { %v805_v18 = vadd.f32 %v801_v63, %v792_v61  ;;  %v1262_v45 = vmul.f32 %v1261_v50, %v2690_v8 }
 0x1e2   : > { %v816_v6 = vadd.f32 %v814_v49, %v805_v18  ;;  %v1250_v18 = vmul.f32 %v1248_v48, %v2705_v15 }
 0x1e3   : > { %1138 = vrot.lane.b32.xlu1 %v1134_v2, %s2029_s3  ;;  %1099 = vrot.lane.b32.xlu2 %v1094_v55, %s2028_s30  ;;  %v1221_v2 = vmul.f32 %v1220_v10, %v2687_v38  ;;  %v1263_v55 = vmul.f32 %v1261_v50, %v2701_v52 }
 0x1e4   : > { %v821_v9 = vadd.f32 %v819_v3, %v816_v6  ;;  %1153 = vrot.lane.b32.xlu0 %v1149_v46, %s2030_s7 }
 0x1e5   : > { %v830_v36 = vpop.permute.xlu1 %829  ;;  %v858_v13 = vpop.permute.xlu2 %857 }
 0x1e6   : > { %v836_v0 = vadd.f32 %v832_v27, %v821_v9  ;;  %v835_v7 = vadd.f32 %v830_v36, %v820_v25  ;;  %v843_v60 = vpop.permute.xlu0 %842 }
 0x1e8   : > { %v848_v11 = vadd.f32 %v843_v60, %v835_v7 }
 0x1ea   : > { %v863_v58 = vadd.f32 %v858_v13, %v848_v11  ;;  %v1276_v13 = vstv %s2726_s16  ;;  %s2797_s16 = sld [smem:[#allocation7 + $0x2c]] }
 0x1eb   : > { %1155 = vrot.lane.b32.xlu1 %v1150_v16, %s2030_s7  ;;  %1125 = vrot.lane.b32.xlu2 %v1121_v5, %s2029_s3  ;;  %v1277_v60 = vmul.f32 %v1276_v13, %v2687_v38 }
 0x1ec   : > { %1168 = vrot.lane.b32.xlu0 %v1163_v26, %s2030_s7 }
 0x1ed   : > { %v845_v62 = vpop.permute.xlu1 %844  ;;  %v873_v22 = vpop.permute.xlu2 %872 }
 0x1ee   : > { %v849_v59 = vadd.f32 %v845_v62, %v836_v0  ;;  %v860_v17 = vpop.permute.xlu0 %859  ;;  %v1289_v0 = vstv %s2729_s19  ;;  %s2805_s19 = sld [smem:[#allocation7 + $0x5d]] }
 0x1ef   : > { %v1290_v11 = vmul.f32 %v1289_v0, %v2690_v8 }
 0x1f0   : > { %v864_v21 = vadd.f32 %v860_v17, %v849_v59  ;;  %v1291_v17 = vmul.f32 %v1289_v0, %v2701_v52 }
 0x1f2   : > { %v877_v29 = vadd.f32 %v873_v22, %v864_v21  ;;  %v996_v22 = vstv %s2739_s26  ;;  %v1001_v21 = vstv %s2741_s29  ;;  %s2809_s26 = sld [smem:[#allocation7 + $0x2d]] }
 0x1f3   : > { %1197 = vrot.lane.b32.xlu1 %v1193_v24, %s2025_s17  ;;  %1140 = vrot.lane.b32.xlu2 %v1135_v19, %s2029_s3  ;;  %v1306_v19 = vmul.f32 %v1304_v23, %v2705_v15  ;;  %s2820_s29 = sld [smem:[#allocation7 + $0x5e]] }
 0x1f4   : > { %1210 = vrot.lane.b32.xlu0 %v1206_v20, %s2025_s17  ;;  %v1002_v20 = vmul.f32 %v1001_v21, %v2586_v31 }
 0x1f5   : > { %v871_v32 = vpop.permute.xlu1 %870  ;;  %v899_v30 = vpop.permute.xlu2 %898 }
 0x1f6   : > { %v876_v14 = vadd.f32 %v871_v32, %v863_v58  ;;  %v886_v28 = vpop.permute.xlu0 %885 }
 0x1f8   : > { %v891_v35 = vadd.f32 %v886_v28, %v876_v14 }
 0x1fa   : > { %v904_v34 = vadd.f32 %v899_v30, %v891_v35 }
 0x1fb   : > { %1212 = vrot.lane.b32.xlu1 %v1207_v41, %s2025_s17  ;;  %1166 = vrot.lane.b32.xlu2 %v1162_v42, %s2030_s7  ;;  %v1317_v41 = vstv %s2751_s20  ;;  %v1332_v42 = vstv %s2754_s23  ;;  %s2831_s20 = sld [smem:[#allocation7 + $0x5f]] }
 0x1fc   : > { %1227 = vrot.lane.b32.xlu0 %v1222_v4, %s2026_s24  ;;  %v1333_v31 = vmul.f32 %v1332_v42, %v2687_v38  ;;  %s2843_s23 = sld [smem:[#allocation7 + $0x54]] }
 0x1fd   : > { %v888_v47 = vpop.permute.xlu1 %887  ;;  %v916_v53 = vpop.permute.xlu2 %915 }
 0x1fe   : > { %v892_v37 = vadd.f32 %v888_v47, %v877_v29  ;;  %v901_v40 = vpop.permute.xlu0 %900  ;;  %v997_v29 = vmul.f32 %v996_v22, %v2583_v39  ;;  %v998_v39 = vmul.f32 %v996_v22, %v2603_v1  ;;  %v1278_v47 = vmul.f32 %v1276_v13, %v2705_v15 }
 0x200   : > { %v905_v51 = vadd.f32 %v901_v40, %v892_v37  ;;  %v1003_v37 = vmul.f32 %v1001_v21, %v2599_v57 }
 0x202   : > { %v920_v27 = vadd.f32 %v916_v53, %v905_v51 }
 0x203   : > { %1238 = vrot.lane.b32.xlu1 %v1234_v56, %s2026_s24  ;;  %1199 = vrot.lane.b32.xlu2 %v1194_v43, %s2025_s17  ;;  %v1345_v43 = vstv %s2768_s28  ;;  %s2847_s28 = sld [smem:[#allocation7 + $0x2f]] }
 0x204   : > { %1253 = vrot.lane.b32.xlu0 %v1249_v33, %s2027_s25  ;;  %v1334_v33 = vmul.f32 %v1332_v42, %v2705_v15  ;;  %v1445_v42 = vstv %s2820_s29  ;;  %s1597_s29 = scalar_lea.sflag [#allocation5], %s2145_s4 }
 0x205   : > { %v914_v25 = vpop.permute.xlu1 %913  ;;  %v942_v61 = vpop.permute.xlu2 %941 }
 0x206   : > { %v919_v63 = vadd.f32 %v914_v25, %v904_v34  ;;  %v927_v54 = vpop.permute.xlu0 %926  ;;  %v1318_v34 = vmul.f32 %v1317_v41, %v2690_v8  ;;  %v1347_v25 = vmul.f32 %v1345_v43, %v2701_v52 }
 0x208   : > { %v932_v49 = vadd.f32 %v927_v54, %v919_v63 }
 0x20a   : > { %v947_v3 = vadd.f32 %v942_v61, %v932_v49 }
 0x20b   : > { %1255 = vrot.lane.b32.xlu1 %v1250_v18, %s2027_s25  ;;  %1225 = vrot.lane.b32.xlu2 %v1221_v2, %s2026_s24  ;;  %v2789_v18 = vld [vmem:[#allocation2 + $0x6] sm:$0xff]  ;;  %v1376_v2 = vstv %s2778_s5  ;;  %s2853_s5 = sld [smem:[#allocation7 + $0x60]] }
 0x20c   : > { %1268 = vrot.lane.b32.xlu0 %v1263_v55, %s2027_s25  ;;  %v2792_v55 = vld [vmem:[#allocation2 + $0x1e] sm:$0xff] }
 0x20d   : > { %v929_v6 = vpop.permute.xlu1 %928  ;;  %v957_v46 = vpop.permute.xlu2 %956 }
 0x20e   : > { %v933_v9 = vadd.f32 %v929_v6, %v920_v27  ;;  %v944_v36 = vpop.permute.xlu0 %943  ;;  %v1305_v27 = vmul.f32 %v1304_v23, %v2687_v38 }
 0x210   : > { %v948_v7 = vadd.f32 %v944_v36, %v933_v9  ;;  %v1319_v9 = vmul.f32 %v1317_v41, %v2701_v52 }
 0x212   : > { %v961_v16 = vadd.f32 %v957_v46, %v948_v7  ;;  %v1377_v46 = vmul.f32 %v1376_v2, %v2789_v18 }
 0x213   : > { %1281 = vrot.lane.b32.xlu1 %v1277_v60, %s2028_s30  ;;  %1240 = vrot.lane.b32.xlu2 %v1235_v12, %s2026_s24 }
 0x214   : > { %1294 = vrot.lane.b32.xlu0 %v1290_v11, %s2028_s30  ;;  %v2803_v11 = vld [vmem:[#allocation2 + $0x26] sm:$0xff] }
 0x215   : > { %v955_v5 = vpop.permute.xlu1 %954  ;;  %v983_v58 = vpop.permute.xlu2 %982 }
 0x216   : > { %v960_v26 = vadd.f32 %v955_v5, %v947_v3  ;;  %v970_v62 = vpop.permute.xlu0 %969  ;;  %v1389_v3 = vstv %s2781_s14  ;;  %s2856_s14 = sld [smem:[#allocation7 + $0x30]] }
 0x217   : > { %v1390_v36 = vmul.f32 %v1389_v3, %v2792_v55 }
 0x218   : > { %v975_v59 = vadd.f32 %v970_v62, %v960_v26  ;;  %v1346_v26 = vmul.f32 %v1345_v43, %v2690_v8  ;;  %v1404_v62 = vstv %s2797_s16 }
 0x21a   : > { %v988_v24 = vadd.f32 %v983_v58, %v975_v59  ;;  %v1391_v58 = vmul.f32 %v1389_v3, %v2803_v11  ;;  %v1488_v3 = vstv %s2847_s28 }
 0x21b   : > { %1296 = vrot.lane.b32.xlu1 %v1291_v17, %s2028_s30  ;;  %1266 = vrot.lane.b32.xlu2 %v1262_v45, %s2027_s25 }
 0x21c   : > { %1311 = vrot.lane.b32.xlu0 %v1306_v19, %s2029_s3  ;;  %v999_v32 = vadd.f32 %v997_v29, %v988_v24  ;;  %v1417_v24 = vstv %s2805_s19  ;;  %v1432_v19 = vstv %s2809_s26 }
 0x21d   : > { %v972_v30 = vpop.permute.xlu1 %971  ;;  %v1016_v14 = vpop.permute.xlu2 %1015  ;;  %v1419_v43 = vmul.f32 %v1417_v24, %v2803_v11 }
 0x21e   : > { %v976_v28 = vadd.f32 %v972_v30, %v961_v16  ;;  %v985_v35 = vpop.permute.xlu0 %984  ;;  %v1004_v10 = vadd.f32 %v1002_v20, %v999_v32  ;;  %v2807_v16 = vld [vmem:[#allocation2 + $0xe] sm:$0xff]  ;;  %v1418_v20 = vmul.f32 %v1417_v24, %v2792_v55  ;;  %v1433_v30 = vmul.f32 %v1432_v19, %v2789_v18 }
 0x21f   : > { %v1406_v22 = vmul.f32 %v1404_v62, %v2807_v16  ;;  %v1378_v32 = vmul.f32 %v1376_v2, %v2807_v16  ;;  %v1446_v2 = vmul.f32 %v1445_v42, %v2792_v55 }
 0x220   : > { %v989_v4 = vadd.f32 %v985_v35, %v976_v28 }
 0x222   : > { %v1000_v53 = vadd.f32 %v998_v39, %v989_v4  ;;  %v1434_v4 = vmul.f32 %v1432_v19, %v2807_v16 }
 0x223   : > { %1322 = vrot.lane.b32.xlu1 %v1318_v34, %s2029_s3  ;;  %1283 = vrot.lane.b32.xlu2 %v1278_v47, %s2028_s30  ;;  %v1405_v34 = vmul.f32 %v1404_v62, %v2789_v18  ;;  %v1447_v47 = vmul.f32 %v1445_v42, %v2803_v11  ;;  %v1516_v62 = vstv %s2856_s14 }
 0x224   : > { %1337 = vrot.lane.b32.xlu0 %v1333_v31, %s2030_s7  ;;  %v1005_v40 = vadd.f32 %v1003_v37, %v1000_v53 }
 0x225   : > { %v1014_v44 = vpop.permute.xlu1 %1013  ;;  %v1042_v1 = vpop.permute.xlu2 %1041 }
 0x226   : > { %v1019_v48 = vadd.f32 %v1014_v44, %v1004_v10  ;;  %v1027_v51 = vpop.permute.xlu0 %1026  ;;  %v1020_v56 = vadd.f32 %v1016_v14, %v1005_v40 }
 0x228   : > { %v1032_v57 = vadd.f32 %v1027_v51, %v1019_v48  ;;  %v1473_v48 = vstv %s2831_s20 }
 0x22a   : > { %v1047_v61 = vadd.f32 %v1042_v1, %v1032_v57  ;;  %v1460_v1 = vstv %s2828_s27  ;;  %v1474_v57 = vmul.f32 %v1473_v48, %v2792_v55 }
 0x22b   : > { %1339 = vrot.lane.b32.xlu1 %v1334_v33, %s2030_s7  ;;  %1309 = vrot.lane.b32.xlu2 %v1305_v27, %s2029_s3 }
 0x22c   : > { %1352 = vrot.lane.b32.xlu0 %v1347_v25, %s2030_s7 }
 0x22d   : > { %v1029_v63 = vpop.permute.xlu1 %1028  ;;  %v1057_v54 = vpop.permute.xlu2 %1056 }
 0x22e   : > { %v1033_v50 = vadd.f32 %v1029_v63, %v1020_v56  ;;  %v1044_v49 = vpop.permute.xlu0 %1043  ;;  %v1461_v56 = vmul.f32 %v1460_v1, %v2789_v18 }
 0x230   : > { %v1048_v6 = vadd.f32 %v1044_v49, %v1033_v50  ;;  %v1475_v49 = vmul.f32 %v1473_v48, %v2803_v11 }
 0x232   : > { %v1061_v13 = vadd.f32 %v1057_v54, %v1048_v6  ;;  %v1185_v6 = vstv %s2843_s23  ;;  %s1967_s23 = scalar_lea.hbm %s2948_s2, 128 }
 0x233   : > { %1381 = vrot.lane.b32.xlu1 %v1377_v46, %s2025_s17  ;;  %1324 = vrot.lane.b32.xlu2 %v1319_v9, %s2029_s3  ;;  %v1490_v9 = vmul.f32 %v1488_v3, %v2807_v16 }
 0x234   : > { %1394 = vrot.lane.b32.xlu0 %v1390_v36, %s2025_s17 }
 0x235   : > { %v1055_v0 = vpop.permute.xlu1 %1054  ;;  %v1083_v7 = vpop.permute.xlu2 %1082 }
 0x236   : > { %v1060_v60 = vadd.f32 %v1055_v0, %v1047_v61  ;;  %v1070_v12 = vpop.permute.xlu0 %1069 }
 0x238   : > { %v1075_v5 = vadd.f32 %v1070_v12, %v1060_v60 }
 0x23a   : > { %v1088_v59 = vadd.f32 %v1083_v7, %v1075_v5 }
 0x23b   : > { %1396 = vrot.lane.b32.xlu1 %v1391_v58, %s2025_s17  ;;  %1350 = vrot.lane.b32.xlu2 %v1346_v26, %s2030_s7  ;;  %v1501_v58 = vstv %s2853_s5 }
 0x23c   : > { %1411 = vrot.lane.b32.xlu0 %v1406_v22, %s2026_s24 }
 0x23d   : > { %v1072_v17 = vpop.permute.xlu1 %1071  ;;  %v1100_v23 = vpop.permute.xlu2 %1099 }
 0x23e   : > { %v1076_v45 = vadd.f32 %v1072_v17, %v1061_v13  ;;  %v1085_v21 = vpop.permute.xlu0 %1084  ;;  %v1186_v13 = vmul.f32 %v1185_v6, %v2690_v8  ;;  %v1462_v17 = vmul.f32 %v1460_v1, %v2807_v16  ;;  %v1517_v8 = vmul.f32 %v1516_v62, %v2789_v18 }
 0x240   : > { %v1089_v29 = vadd.f32 %v1085_v21, %v1076_v45  ;;  %v1187_v45 = vmul.f32 %v1185_v6, %v2701_v52 }
 0x242   : > { %v1104_v14 = vadd.f32 %v1100_v23, %v1089_v29 }
 0x243   : > { %1422 = vrot.lane.b32.xlu1 %v1418_v20, %s2026_s24  ;;  %1383 = vrot.lane.b32.xlu2 %v1378_v32, %s2025_s17  ;;  %s2841_s17 = sld [smem:[#allocation7 + $0x23]] }
 0x244   : > { %1437 = vrot.lane.b32.xlu0 %v1433_v30, %s2027_s25 }
 0x245   : > { %v1098_v28 = vpop.permute.xlu1 %1097  ;;  %v1126_v35 = vpop.permute.xlu2 %1125 }
 0x246   : > { %v1103_v41 = vadd.f32 %v1098_v28, %v1088_v59  ;;  %v1111_v10 = vpop.permute.xlu0 %1110  ;;  %v1502_v59 = vmul.f32 %v1501_v58, %v2792_v55  ;;  %v1489_v28 = vmul.f32 %v1488_v3, %v2789_v18 }
 0x248   : > { %v1116_v39 = vadd.f32 %v1111_v10, %v1103_v41 }
 0x249   : > { %v1180_v54 = vstv %s2841_s17 }
 0x24a   : > { %v1131_v53 = vadd.f32 %v1126_v35, %v1116_v39  ;;  %v1181_v36 = vmul.f32 %v1180_v54, %v2687_v38  ;;  %v1182_v38 = vmul.f32 %v1180_v54, %v2705_v15 }
 0x24b   : > { %1439 = vrot.lane.b32.xlu1 %v1434_v4, %s2027_s25  ;;  %1409 = vrot.lane.b32.xlu2 %v1405_v34, %s2026_s24  ;;  %v1503_v34 = vmul.f32 %v1501_v58, %v2803_v11 }
 0x24c   : > { %1452 = vrot.lane.b32.xlu0 %v1447_v47, %s2027_s25 }
 0x24d   : > { %v1113_v31 = vpop.permute.xlu1 %1112  ;;  %v1141_v37 = vpop.permute.xlu2 %1140 }
 0x24e   : > { %v1117_v40 = vadd.f32 %v1113_v31, %v1104_v14  ;;  %v1128_v44 = vpop.permute.xlu0 %1127  ;;  %v1518_v14 = vmul.f32 %v1516_v62, %v2807_v16 }
 0x250   : > { %v1132_v51 = vadd.f32 %v1128_v44, %v1117_v40 }
 0x252   : > { %v1145_v33 = vadd.f32 %v1141_v37, %v1132_v51 }
 0x253   : > { %1465 = vrot.lane.b32.xlu1 %v1461_v56, %s2028_s30  ;;  %1424 = vrot.lane.b32.xlu2 %v1419_v43, %s2026_s24  ;;  %s2870_s24 = sld [smem:[#allocation7 + $0x61]] }
 0x254   : > { %1478 = vrot.lane.b32.xlu0 %v1474_v57, %s2028_s30 }
 0x255   : > { %v1139_v27 = vpop.permute.xlu1 %1138  ;;  %v1167_v25 = vpop.permute.xlu2 %1166 }
 0x256   : > { %v1144_v61 = vadd.f32 %v1139_v27, %v1131_v53  ;;  %v1154_v63 = vpop.permute.xlu0 %1153 }
 0x258   : > { %v1159_v50 = vadd.f32 %v1154_v63, %v1144_v61 }
 0x259   : > { %v1529_v32 = vstv %s2870_s24 }
 0x25a   : > { %v1172_v46 = vadd.f32 %v1167_v25, %v1159_v50  ;;  %v1531_v52 = vmul.f32 %v1529_v32, %v2803_v11  ;;  %v1530_v40 = vmul.f32 %v1529_v32, %v2792_v55 }
 0x25b   : > { %1480 = vrot.lane.b32.xlu1 %v1475_v49, %s2028_s30  ;;  %1450 = vrot.lane.b32.xlu2 %v1446_v2, %s2027_s25  ;;  %s1791_s25 = sld [smem:[#allocation7 + $0x2a]] }
 0x25c   : > { %1495 = vrot.lane.b32.xlu0 %v1490_v9, %s2029_s3  ;;  %v1183_v0 = vadd.f32 %v1181_v36, %v1172_v46 }
 0x25d   : > { %v1156_v7 = vpop.permute.xlu1 %1155  ;;  %v1200_v60 = vpop.permute.xlu2 %1199 }
 0x25e   : > { %v1160_v12 = vadd.f32 %v1156_v7, %v1145_v33  ;;  %v1169_v5 = vpop.permute.xlu0 %1168  ;;  %v1188_v26 = vadd.f32 %v1186_v13, %v1183_v0 }
 0x260   : > { %v1173_v22 = vadd.f32 %v1169_v5, %v1160_v12 }
 0x261   : > { %v1364_v7 = vstv %s1791_s25 }
 0x262   : > { %v1184_v23 = vadd.f32 %v1182_v38, %v1173_v22 }
 0x263   : > { %1506 = vrot.lane.b32.xlu1 %v1502_v59, %s2029_s3  ;;  %1467 = vrot.lane.b32.xlu2 %v1462_v17, %s2028_s30  ;;  %s1792_s30 = sld [smem:[#allocation7 + $0x5b]] }
 0x264   : > { %1521 = vrot.lane.b32.xlu0 %v1517_v8, %s2030_s7  ;;  %v1189_v21 = vadd.f32 %v1187_v45, %v1184_v23 }
 0x265   : > { %v1198_v24 = vpop.permute.xlu1 %1197  ;;  %v1226_v15 = vpop.permute.xlu2 %1225 }
 0x266   : > { %v1203_v19 = vadd.f32 %v1198_v24, %v1188_v26  ;;  %v1211_v29 = vpop.permute.xlu0 %1210  ;;  %v1204_v20 = vadd.f32 %v1200_v60, %v1189_v21  ;;  %v1365_v26 = vmul.f32 %v1364_v7, %v2789_v18  ;;  %v1366_v21 = vmul.f32 %v1364_v7, %v2807_v16 }
 0x268   : > { %v1216_v30 = vadd.f32 %v1211_v29, %v1203_v19 }
 0x269   : > { %v1369_v5 = vstv %s1792_s30 }
 0x26a   : > { %v1231_v35 = vadd.f32 %v1226_v15, %v1216_v30  ;;  %v1370_v38 = vmul.f32 %v1369_v5, %v2792_v55  ;;  %v1371_v19 = vmul.f32 %v1369_v5, %v2803_v11 }
 0x26b   : > { %1523 = vrot.lane.b32.xlu1 %v1518_v14, %s2030_s7  ;;  %1493 = vrot.lane.b32.xlu2 %v1489_v28, %s2029_s3 }
 0x26c   : > { %1536 = vrot.lane.b32.xlu0 %v1531_v52, %s2030_s7 }
 0x26d   : > { %v1213_v41 = vpop.permute.xlu1 %1212  ;;  %v1241_v10 = vpop.permute.xlu2 %1240 }
 0x26e   : > { %v1217_v42 = vadd.f32 %v1213_v41, %v1204_v20  ;;  %v1228_v39 = vpop.permute.xlu0 %1227 }
 0x270   : > { %v1232_v4 = vadd.f32 %v1228_v39, %v1217_v42 }
 0x272   : > { %v1245_v47 = vadd.f32 %v1241_v10, %v1232_v4 }
 0x273   : > { %1508 = vrot.lane.b32.xlu2 %v1503_v34, %s2029_s3  ;;  %s1813_s3 = sshll.u32 %s2069_s13, 6 }
 0x274   : > { %s1608_s13 = scalar_lea.hbm %s2948_s2, %s1813_s3 }
 0x275   : > { %v1239_v53 = vpop.permute.xlu1 %1238  ;;  %v1267_v31 = vpop.permute.xlu2 %1266  ;;  %s1611_s26 = sshll.u32 %s1608_s13, 4  ;;  %s1612_s26 = int_to_ptr.hbm [resolvable:$true] %s1611_s26 }
 0x276   : > { %v1254_v37 = vpop.permute.xlu0 %1253  ;;  %v1244_v51 = vadd.f32 %v1239_v53, %v1231_v35  ;;  %s1961_s27 = sshra.s32 %s1612_s26, 4  ;;  %s1962_s27 = int_to_ptr.hbm [resolvable:$true] %s1961_s27 }
 0x277   : > { %s1963_s20 = scalar_lea.hbm %s1962_s27, 64  ;;  %p1968_p0 = scmp.lt.s32.totalorder %s1962_s27, %s2948_s2 }
 0x278   : > { %v1259_v57 = vadd.f32 %v1254_v37, %v1244_v51  ;;  %p1964_p4 = scmp.ne.s32.totalorder %s1962_s27, %s1963_s20  ;;  %p1969_p3 = scmp.lt.s32.totalorder %s1967_s23, %s1963_s20 }
 0x27a   : > { %v1272_v25 = vadd.f32 %v1267_v31, %v1259_v57  ;;  %p1965_p6 = pnand %p1964_p4, %p2100_p11  ;;  %p1970_p5 = por %p1969_p3, %p1968_p0 }
 0x27b   : > { %1534 = vrot.lane.b32.xlu2 %v1530_v40, %s2030_s7  ;;  %s177_s7 = scalar_lea.vmem [#allocation8], %s1705_s6 }
 0x27c   : > { %s1609_s6 = sshll.u32 %s177_s7, 4  ;;  %p1966_p13 = pneg %p1965_p6  ;;  %s1610_s6 = int_to_ptr.vmem [resolvable:$true] %s1609_s6 }
 0x27d   : > { %v1256_v44 = vpop.permute.xlu1 %1255  ;;  %v1284_v1 = vpop.permute.xlu2 %1283 }
 0x27e   : > { %v1269_v48 = vpop.permute.xlu0 %1268  ;;  %v1260_v27 = vadd.f32 %v1256_v44, %v1245_v47  ;;  %p1971_p8 = pnand %p1970_p5, %p1966_p13 }
 0x280   : > { %v1273_v50 = vadd.f32 %v1269_v48, %v1260_v27 }
 0x282   : > { %v1288_v3 = vadd.f32 %v1284_v1, %v1273_v50 }
 0x285   : > { %v1282_v56 = vpop.permute.xlu1 %1281  ;;  %v1310_v43 = vpop.permute.xlu2 %1309 }
 0x286   : > { %v1295_v33 = vpop.permute.xlu0 %1294  ;;  %v1287_v61 = vadd.f32 %v1282_v56, %v1272_v25 }
 0x288   : > { %v1300_v2 = vadd.f32 %v1295_v33, %v1287_v61 }
 0x28a   : > { %v1315_v46 = vadd.f32 %v1310_v43, %v1300_v2 }
 0x28d   : > { %v1297_v63 = vpop.permute.xlu1 %1296  ;;  %v1325_v54 = vpop.permute.xlu2 %1324 }
 0x28e   : > { %v1312_v49 = vpop.permute.xlu0 %1311  ;;  %v1301_v6 = vadd.f32 %v1297_v63, %v1288_v3 }
 0x290   : > { %v1316_v60 = vadd.f32 %v1312_v49, %v1301_v6 }
 0x292   : > { %v1329_v62 = vadd.f32 %v1325_v54, %v1316_v60 }
 0x295   : > { %v1323_v9 = vpop.permute.xlu1 %1322  ;;  %v1351_v36 = vpop.permute.xlu2 %1350 }
 0x296   : > { %v1328_v13 = vadd.f32 %v1323_v9, %v1315_v46  ;;  %v1338_v0 = vpop.permute.xlu0 %1337 }
 0x298   : > { %v1343_v12 = vadd.f32 %v1338_v0, %v1328_v13 }
 0x29a   : > { %v1356_v58 = vadd.f32 %v1351_v36, %v1343_v12 }
 0x29c   : > { %v1367_v22 = vadd.f32 %v1365_v26, %v1356_v58 }
 0x29d   : > { %v1340_v59 = vpop.permute.xlu1 %1339  ;;  %v1384_v17 = vpop.permute.xlu2 %1383 }
 0x29e   : > { %v1344_v23 = vadd.f32 %v1340_v59, %v1329_v62  ;;  %v1353_v8 = vpop.permute.xlu0 %1352  ;;  %v1372_v45 = vadd.f32 %v1370_v38, %v1367_v22 }
 0x2a0   : > { %v1357_v24 = vadd.f32 %v1353_v8, %v1344_v23 }
 0x2a2   : > { %v1368_v15 = vadd.f32 %v1366_v21, %v1357_v24 }
 0x2a4   : > { %v1373_v29 = vadd.f32 %v1371_v19, %v1368_v15 }
 0x2a5   : > { %v1382_v20 = vpop.permute.xlu1 %1381  ;;  %v1410_v32 = vpop.permute.xlu2 %1409 }
 0x2a6   : > { %v1395_v30 = vpop.permute.xlu0 %1394  ;;  %v1387_v41 = vadd.f32 %v1382_v20, %v1372_v45  ;;  %v1388_v4 = vadd.f32 %v1384_v17, %v1373_v29 }
 0x2a8   : > { %v1400_v10 = vadd.f32 %v1395_v30, %v1387_v41  ;;  %v1894_v30 = vld [vmem:[%s2151_s8] sm:$0xff]  ;;  %v1897_v41 = vld [vmem:[%s2151_s8 + $0x30] sm:$0xff] }
 0x2aa   : > { %v1415_v47 = vadd.f32 %v1410_v32, %v1400_v10 }
 0x2ad   : > { %v1397_v18 = vpop.permute.xlu1 %1396  ;;  %v1425_v14 = vpop.permute.xlu2 %1424 }
 0x2ae   : > { %v1412_v28 = vpop.permute.xlu0 %1411  ;;  %v1401_v34 = vadd.f32 %v1397_v18, %v1388_v4 }
 0x2b0   : > { %v1416_v11 = vadd.f32 %v1412_v28, %v1401_v34 }
 0x2b2   : > { %v1429_v1 = vadd.f32 %v1425_v14, %v1416_v11  ;;  %v1895_v14 = vld [vmem:[%s2151_s8 + $0x10] sm:$0xff] }
 0x2b5   : > { %v1423_v55 = vpop.permute.xlu1 %1422  ;;  %v1451_v52 = vpop.permute.xlu2 %1450 }
 0x2b6   : > { %v1438_v35 = vpop.permute.xlu0 %1437  ;;  %v1428_v53 = vadd.f32 %v1423_v55, %v1415_v47  ;;  %v1896_v55 = vld [vmem:[%s2151_s8 + $0x20] sm:$0xff] }
 0x2b8   : > { %v1443_v40 = vadd.f32 %v1438_v35, %v1428_v53  ;;  %v1898_v53 = vld [vmem:[%s2151_s8 + $0x8] sm:$0xff] }
 0x2ba   : > { %v1456_v51 = vadd.f32 %v1451_v52, %v1443_v40  ;;  %v1900_v40 = vld [vmem:[%s2151_s8 + $0x28] sm:$0xff] }
 0x2bd   : > { %v1440_v42 = vpop.permute.xlu1 %1439  ;;  %v1468_v39 = vpop.permute.xlu2 %1467 }
 0x2be   : > { %v1453_v16 = vpop.permute.xlu0 %1452  ;;  %v1444_v48 = vadd.f32 %v1440_v42, %v1429_v1  ;;  %v1901_v1 = vld [vmem:[%s2151_s8 + $0x38] sm:$0xff] }
 0x2c0   : > { %v1457_v57 = vadd.f32 %v1453_v16, %v1444_v48 }
 0x2c2   : > { %v1472_v61 = vadd.f32 %v1468_v39, %v1457_v57 }
 0x2c5   : > { %v1466_v31 = vpop.permute.xlu1 %1465  ;;  %v1494_v37 = vpop.permute.xlu2 %1493 }
 0x2c6   : > { %v1479_v44 = vpop.permute.xlu0 %1478  ;;  %v1471_v56 = vadd.f32 %v1466_v31, %v1456_v51  ;;  %v1899_v31 = vld [vmem:[%s2151_s8 + $0x18] sm:$0xff] }
 0x2c8   : > { %v1484_v25 = vadd.f32 %v1479_v44, %v1471_v56 }
 0x2ca   : > { %v1499_v54 = vadd.f32 %v1494_v37, %v1484_v25 }
 0x2cd   : > { %v1481_v43 = vpop.permute.xlu1 %1480  ;;  %v1509_v27 = vpop.permute.xlu2 %1508 }
 0x2ce   : > { %v1496_v33 = vpop.permute.xlu0 %1495  ;;  %v1485_v63 = vadd.f32 %v1481_v43, %v1472_v61 }
 0x2d0   : > { %v1500_v3 = vadd.f32 %v1496_v33, %v1485_v63 }
 0x2d2   : > { %v1513_v13 = vadd.f32 %v1509_v27, %v1500_v3 }
 0x2d5   : > { %v1507_v50 = vpop.permute.xlu1 %1506  ;;  %v1535_v46 = vpop.permute.xlu2 %1534 }
 0x2d6   : > { %v1512_v49 = vadd.f32 %v1507_v50, %v1499_v54  ;;  %v1522_v2 = vpop.permute.xlu0 %1521 }
 0x2d8   : > { %v1527_v6 = vadd.f32 %v1522_v2, %v1512_v49 }
 0x2da   : > { %v1540_v9 = vadd.f32 %v1535_v46, %v1527_v6 }
 0x2dc   : > { %v1805_v36 = vmul.f32 -1.442695, %v1540_v9 }
 0x2dd   : > { %v1524_v0 = vpop.permute.xlu1 %1523 }
 0x2de   : > { %1886 = vpow2.f32 %v1805_v36  ;;  %v1528_v7 = vadd.f32 %v1524_v0, %v1513_v13  ;;  %v1537_v60 = vpop.permute.xlu0 %1536 }
 0x2e0   : > { %v1541_v12 = vadd.f32 %v1537_v60, %v1528_v7 }
 0x2e2   : > { %v1806_v5 = vmul.f32 -1.442695, %v1541_v12 }
 0x2e4   : > { %v1887_v58 = vpop.eup %1886  ;;  %1888 = vpow2.f32 %v1806_v5 }
 0x2e5   : > { %v1548_v26 = vadd.f32 1.0, %v1887_v58 }
 0x2e7   : > { %1890 = vrcp.f32 %v1548_v26  ;;  %v1561_v23 = vand.u32 2147483648, %v1548_v26  ;;  %v1559_v45 = vand.u32 2147483647, %v1548_v26  ;;  %vm1555_vm6 = vweird.f32 %v1548_v26 }
 0x2e9   : > { %v1562_v19 = vor.u32 1.1754944e-38, %v1561_v23  ;;  %vm1560_vm8 = vcmp.eq.f32.partialorder %v1559_v45, 8.507059e+37 }
 0x2ea   : > { %v1889_v62 = vpop.eup %1888 }
 0x2eb   : > { %v1549_v38 = vadd.f32 1.0, %v1889_v62 }
 0x2ed   : > { %v1891_v22 = vpop.eup %1890  ;;  %1892 = vrcp.f32 %v1549_v38  ;;  %v1576_v35 = vand.u32 2147483648, %v1549_v38  ;;  %v1574_v39 = vand.u32 2147483647, %v1549_v38  ;;  %vm1570_vm10 = vweird.f32 %v1549_v38 }
 0x2ee   : > { %v1551_v59 = vmul.f32 %v1891_v22, %v1548_v26  ;;  %vm1556_vm5 = vweird.f32 %v1891_v22 }
 0x2ef   : > { %vm1557_vm7 = vmor %vm1555_vm6, %vm1556_vm5  ;;  %v1577_v16 = vor.u32 1.1754944e-38, %v1576_v35  ;;  %vm1575_vm12 = vcmp.eq.f32.partialorder %v1574_v39, 8.507059e+37 }
 0x2f0   : > { %v1552_v17 = vsub.f32 1.0, %v1551_v59 }
 0x2f2   : > { %v1553_v8 = vmul.f32 %v1891_v22, %v1552_v17 }
 0x2f3   : > { %v1893_v21 = vpop.eup %1892 }
 0x2f4   : > { %v1554_v24 = vadd.f32 %v1891_v22, %v1553_v8  ;;  %v1566_v15 = vmul.f32 %v1893_v21, %v1549_v38  ;;  %vm1571_vm9 = vweird.f32 %v1893_v21 }
 0x2f5   : > { %vm1572_vm11 = vmor %vm1570_vm10, %vm1571_vm9 }
 0x2f6   : > { %v1558_v29 = vsel %vm1557_vm7, %v1891_v22, %v1554_v24  ;;  %v1567_v20 = vsub.f32 1.0, %v1566_v15 }
 0x2f7   : > { %v1563_v32 = vsel %vm1560_vm8, %v1562_v19, %v1558_v29 }
 0x2f8   : > { %v1580_v18 = vmul.f32 %v1894_v30, %v1563_v32  ;;  %v1582_v28 = vmul.f32 %v1895_v14, %v1563_v32  ;;  %v1584_v52 = vmul.f32 %v1896_v55, %v1563_v32  ;;  %v1586_v10 = vmul.f32 %v1897_v41, %v1563_v32 }
 0x2f9   : > { %v1568_v42 = vmul.f32 %v1893_v21, %v1567_v20 }
 0x2fa   : > { %1588 = vst.msk [vmem:[%s177_s7] sm:$0xff] %vm186_vm0, %v1580_v18 }
 0x2fb   : > { %1590 = vst.msk [vmem:[%s177_s7 + $0x10] sm:$0xff] %vm186_vm0, %v1582_v28  ;;  %v1569_v4 = vadd.f32 %v1893_v21, %v1568_v42 }
 0x2fc   : > { %1592 = vst.msk [vmem:[%s177_s7 + $0x20] sm:$0xff] %vm186_vm0, %v1584_v52 }
 0x2fd   : > { %1594 = vst.msk [vmem:[%s177_s7 + $0x30] sm:$0xff] %vm186_vm0, %v1586_v10  ;;  %v1573_v34 = vsel %vm1572_vm11, %v1893_v21, %v1569_v4 }
 0x2fe   : > { %v1578_v47 = vsel %vm1575_vm12, %v1577_v16, %v1573_v34 }
 0x2ff   : > { %v1581_v11 = vmul.f32 %v1898_v53, %v1578_v47  ;;  %v1583_v37 = vmul.f32 %v1899_v31, %v1578_v47  ;;  %v1585_v44 = vmul.f32 %v1900_v40, %v1578_v47  ;;  %v1587_v48 = vmul.f32 %v1901_v1, %v1578_v47 }
 0x301   : > { %1589 = vst.msk [vmem:[%s177_s7 + $0x8] sm:$0xff] %vm186_vm0, %v1581_v11 }
 0x302   : > { %1591 = vst.msk [vmem:[%s177_s7 + $0x18] sm:$0xff] %vm186_vm0, %v1583_v37 }
 0x303   : > { %1593 = vst.msk [vmem:[%s177_s7 + $0x28] sm:$0xff] %vm186_vm0, %v1585_v44 }
 0x304   : > { %1595 = vst.msk [vmem:[%s177_s7 + $0x38] sm:$0xff] %vm186_vm0, %v1587_v48 }
 0x305   : > { %1974 = shalt.err (!%p1971_p8)
}
 0x306   : > { %s2031_s4 = smov 128   ;;  %s2032_s14 = smov 8  }
 0x307   : > { %1820 = dma.vmem_to_hbm [thread:$0]  (%p2100_p11), %s1610_s6, 1024, %s1612_s26, %s1597_s29, %s2031_s4, %s2031_s4, %s2032_s14  }
 0x308 PF: > { %s1626_s24 = sand.u32 1, %s2005_s9   ;;  %p2955_p9 = scmp.ge.s32.totalorder %s2017_s12, 2 }
 0x309   : > { %s1627_s25 = scalar_lea.sflag [#allocation5], %s1626_s24 }
 0x30a   : > { %p1831_p10 = pnand %p2955_p9, %p2104_p12 }
 0x30c   : > { %p1832_p1 = pneg %p1831_p10 }
 0x30e   : > { %2000 = dma.done.wait (%p1832_p1), %s1627_s25, 1024  }
 0x30f   : > { %2002 = vsyncadd (%p1832_p1), %s1627_s25, 4294966272  ;;  %p16_p2 = scmp.ge.s32.totalorder %s2073_s15, 4   ;;  %s2956_s9 = smov %s2009_s10 }
 0x310   : > { %s2957_s10 = smov %s2013_s11  ;;  %s2958_s11 = smov %s2085_s18 }
 0x311   : > { %s2959_s12 = smov %s2073_s15  ;;  %18 = sbr.rel (!%p16_p2) target bundleno = 6 (0x6), region = 79 }
 0x316   :  { %1633 = vsyncpa [#allocation4], 1 }
 0x317   :  { %1635 = vsyncpa [#allocation4 + $0x1], 1 }
 0x318   :  { %1636 = vsyncpa [#allocation5], 1 }
 0x319   :  { %1638 = vsyncpa [#allocation5 + $0x1], 1 }
 0x31a   :  { %1639 = vsyncpa [#allocation6], 1 }
 0x31b   :  { %1641 = vsyncpa [#allocation6 + $0x1], 1 }

</bundles_post_ra>
